<compile_context>
chip_gen: v7x
topology: tpu7x:2x2x1
jax: 0.10.0
libtpu: 0.0.40
codegen_flags: <defaults>
</compile_context>

<pallas_src>
import jax
import jax.numpy as jnp
from jax import lax
from jax.experimental import pallas as pl
from jax.experimental.pallas import tpu as pltpu

N_PTS = 128      # points per shape (lane dim)
CPAD = 8         # padded coordinate rows (xyz + zero pad) -> one sublane group
T_STEPS = 4      # number of predicted intermediate shapes
HIDDEN = 32      # MLP hidden width
FEAT = 8         # logical per-point MLP input: [x(3), y(3), t(1), pad(1)]

DATA_ROWS = 3 * CPAD       # 24: x_pad | y_pad | [x|y] MLP feature block (each (8, N))
W_ROWS = HIDDEN + CPAD     # 40: [w1^T | b1] stacked over [w2^T | b2]
W_LANES = 128              # lane-dense weight slab width


# ----------------------------------------------------------------------------
# Fused kernel: MLP prediction + interpolation sequence + distortion energy,
# one grid step per (shape_x, shape_y) pair; everything stays in VMEM/vregs.
# ----------------------------------------------------------------------------
def _fused_kernel(data_ref, w_ref, o_ref):
    # ---- unpack the two lane-dense input slabs (static, one-time slices) ----
    x = data_ref[0:CPAD, :]                        # (8, N)   rows 0-2 = x, rest 0
    y = data_ref[CPAD:2 * CPAD, :]                 # (8, N)   rows 0-2 = y, rest 0
    feat = data_ref[2 * CPAD:3 * CPAD, :]          # (8, N)   rows 0-2 = x, 3-5 = y, 6-7 = 0

    w1t = w_ref[0:HIDDEN, 0:FEAT]                  # (32, 8)  = w1^T (col 6 = t weight)
    b1 = w_ref[0:HIDDEN, FEAT:FEAT + 1]            # (32, 1)
    w1_tcol = w_ref[0:HIDDEN, 6:7]                 # (32, 1)  t-feature column of w1^T
    w2t = w_ref[HIDDEN:HIDDEN + CPAD, 0:HIDDEN]    # (8, 32)  = w2^T, pad rows zeroed
    b2 = w_ref[HIDDEN:HIDDEN + CPAD, HIDDEN:HIDDEN + 1]  # (8, 1), pad rows zeroed

    # ---- layer 1: single fused matmul over [x | y] features (t-independent part) ----
    base = jnp.dot(w1t, feat, preferred_element_type=jnp.float32) + b1     # (32, N)

    # ---- all T hidden blocks side by side -> one ReLU + one layer-2 matmul ----
    tvals = [(k + 1) / (T_STEPS + 1) for k in range(T_STEPS)]
    h_all = jnp.concatenate([base + tv * w1_tcol for tv in tvals], axis=1)  # (32, T*N)
    h_all = jnp.maximum(h_all, 0.0)
    disp_all = jnp.dot(w2t, h_all, preferred_element_type=jnp.float32) + b2  # (8, T*N)
    # pad rows of disp_all are structurally zero (w2^T / b2 pad rows zeroed host-side)

    # ---- pairwise distances via homogeneous-coordinate Gram trick (no transposes) ----
    rows = lax.broadcasted_iota(jnp.int32, (CPAD, N_PTS), 0)
    row6 = jnp.where(rows == 6, 1.0, 0.0).astype(jnp.float32)   # constant masks, hoisted
    row7 = jnp.where(rows == 7, 1.0, 0.0).astype(jnp.float32)

    def pair_dist(frame):
        # frame: (8, N) with pad rows (3..7) == 0.
        psq = jnp.sum(frame * frame, axis=0, keepdims=True)     # (1, N)
        lhs = frame + row6 + row7 * psq                         # rows [ p, 0,0,0, 1,   |p|^2 ]
        rhs = row6 * psq + row7 - 2.0 * frame                   # rows [-2p, 0,0,0, |p|^2, 1 ]
        # lhs^T @ rhs : D[i, j] = |p_i|^2 + |p_j|^2 - 2 <p_i, p_j>
        return lax.dot_general(lhs, rhs, (((0,), (0,)), ((), ())),
                               preferred_element_type=jnp.float32)          # (N, N)

    # ---- streaming as-isometric-as-possible energy over consecutive frames ----
    acc = jnp.zeros((N_PTS, N_PTS), jnp.float32)
    d_prev = pair_dist(x)                                       # frame 0 = shape_x
    for k, tv in enumerate(tvals):
        frame = (1.0 - tv) * x + tv * y + disp_all[:, k * N_PTS:(k + 1) * N_PTS]
        d_cur = pair_dist(frame)
        diff = d_prev - d_cur
        acc = acc + diff * diff                                 # elementwise, no reduce in loop
        d_prev = d_cur
    diff = d_prev - pair_dist(y)                                # final pair with shape_y
    acc = acc + diff * diff

    o_ref[...] = jnp.sum(acc, keepdims=True)                    # single (1, 1) store


def fused_interpolation_loss(data_slab, w_slab):
    """data_slab: (B, 24, 128) f32, w_slab: (40, 128) f32 -> (B,) f32 losses."""
    B = data_slab.shape[0]
    out = pl.pallas_call(
        _fused_kernel,
        out_shape=jax.ShapeDtypeStruct((B, 1, 1), jnp.float32),
        grid_spec=pltpu.PrefetchScalarGridSpec(
            num_scalar_prefetch=0,
            grid=(B,),
            in_specs=[
                pl.BlockSpec((None, DATA_ROWS, N_PTS), lambda b: (b, 0, 0)),
                pl.BlockSpec((W_ROWS, W_LANES), lambda b: (0, 0)),   # constant across steps
            ],
            out_specs=pl.BlockSpec((None, 1, 1), lambda b: (b, 0, 0)),
        ),
        compiler_params=pltpu.CompilerParams(
            dimension_semantics=("parallel",)),   # pairs are independent (2-TC split on v7x)
    )(data_slab, w_slab)
    return out[:, 0, 0]


# ----------------------------------------------------------------------------
# Module structure mirroring the PyTorch reference
# ----------------------------------------------------------------------------
class InterpolationEnergy:
    """Pairwise squared-distance distortion energy (as-isometric-as-possible)."""

    def forward_single(self, p, q):
        psq = jnp.sum(p * p, axis=-1, keepdims=True)
        qsq = jnp.sum(q * q, axis=-1, keepdims=True)
        dp = psq + psq.T - 2.0 * p @ p.T
        dq = qsq + qsq.T - 2.0 * q @ q.T
        return jnp.sum((dp - dq) ** 2)


class InterpolationModBase:
    def __init__(self, interp_energy: InterpolationEnergy):
        self.interp_energy = interp_energy

    def get_pred(self, shape_x, shape_y):
        raise NotImplementedError()

    def compute_loss(self, shape_x, shape_y, point_pred_arr):
        raise NotImplementedError()

    def forward(self, shape_x, shape_y):
        point_pred_arr = self.get_pred(shape_x, shape_y)
        return self.compute_loss(shape_x, shape_y, point_pred_arr)


class InterpolationModMLP(InterpolationModBase):
    # TODO(synk): get_pred/compute_loss are abstract in the reference module; this is a
    # minimal concrete instantiation consistent with its interpolation-energy semantics.
    def __init__(self, interp_energy, key):
        super().__init__(interp_energy)
        k1, k2 = jax.random.split(key)
        self.w1 = 0.1 * jax.random.normal(k1, (FEAT, HIDDEN), jnp.float32)
        self.b1 = jnp.zeros((1, HIDDEN), jnp.float32)
        self.w2 = 0.1 * jax.random.normal(k2, (HIDDEN, CPAD), jnp.float32)
        self.b2 = jnp.zeros((1, CPAD), jnp.float32)

        # One constant, lane-dense weight slab for the kernel (built once, 1 DMA per step):
        #   rows [0, HIDDEN)         : cols 0-7 = w1^T, col 8 = b1, rest 0
        #   rows [HIDDEN, HIDDEN+8)  : cols 0-31 = w2^T (pad output rows zeroed),
        #                              col 32 = b2 (pad entries zeroed), rest 0
        slab = jnp.zeros((W_ROWS, W_LANES), jnp.float32)
        slab = slab.at[0:HIDDEN, 0:FEAT].set(self.w1.T)
        slab = slab.at[0:HIDDEN, FEAT].set(self.b1[0])
        slab = slab.at[HIDDEN:HIDDEN + 3, 0:HIDDEN].set(self.w2.T[0:3])  # pad rows stay zero
        slab = slab.at[HIDDEN:HIDDEN + 3, HIDDEN].set(self.b2[0, 0:3])   # pad entries stay zero
        self.w_slab = slab

    # --- pure-JAX paths, kept for API compatibility / correctness reference ---
    def get_pred(self, shape_x, shape_y):
        t = jnp.arange(1, T_STEPS + 1, dtype=jnp.float32) / (T_STEPS + 1)
        feats = jnp.concatenate(
            [
                jnp.broadcast_to(shape_x[None], (T_STEPS, N_PTS, 3)),
                jnp.broadcast_to(shape_y[None], (T_STEPS, N_PTS, 3)),
                jnp.broadcast_to(t[:, None, None], (T_STEPS, N_PTS, 1)),
            ],
            axis=-1,
        )
        feats = jnp.pad(feats, ((0, 0), (0, 0), (0, FEAT - 7))).reshape(T_STEPS * N_PTS, FEAT)
        h = jnp.maximum(feats @ self.w1 + self.b1, 0.0)
        disp = (h @ self.w2 + self.b2).reshape(T_STEPS, N_PTS, CPAD)[..., :3]
        lin = (1.0 - t)[:, None, None] * shape_x[None] + t[:, None, None] * shape_y[None]
        return lin + disp

    def compute_loss(self, shape_x, shape_y, point_pred_arr):
        seq = jnp.concatenate([shape_x[None], point_pred_arr, shape_y[None]], axis=0)
        total = jnp.float32(0.0)
        for k in range(seq.shape[0] - 1):
            total = total + self.interp_energy.forward_single(seq[k], seq[k + 1])
        return total

    # --- hot path: fused get_pred + compute_loss, transposed lane-dense layout ---
    def _pack_data(self, shape_x, shape_y):
        # shape_x / shape_y: (B, N, 3)  ->  (B, 24, N) slab: [x_pad | y_pad | mlp feats]
        xT = jnp.swapaxes(shape_x, -1, -2)                         # (B, 3, N)
        yT = jnp.swapaxes(shape_y, -1, -2)
        pad5 = jnp.zeros(xT.shape[:-2] + (CPAD - 3, N_PTS), jnp.float32)
        pad2 = jnp.zeros(xT.shape[:-2] + (2, N_PTS), jnp.float32)
        return jnp.concatenate([xT, pad5, yT, pad5, xT, yT, pad2], axis=-2)

    def forward_batched(self, shape_x, shape_y):
        """shape_x, shape_y: (B, N, 3) -> (B,) losses, one grid step per pair."""
        data = self._pack_data(shape_x, shape_y)
        return fused_interpolation_loss(data, self.w_slab)

    def forward(self, shape_x, shape_y):
        return self.forward_batched(shape_x[None], shape_y[None])[0]


# ----------------------------------------------------------------------------
# Pure-JAX reference (same composition as the abstract base: compute_loss(get_pred))
# ----------------------------------------------------------------------------
def _reference_loss(mod, shape_x, shape_y):
    pred = mod.get_pred(shape_x, shape_y)
    return mod.compute_loss(shape_x, shape_y, pred)


if __name__ == "__main__":
    key = jax.random.PRNGKey(0)
    kx, ky, kp = jax.random.split(key, 3)
    B = 2
    shape_x = jax.random.normal(kx, (B, N_PTS, 3), jnp.float32)
    shape_y = jax.random.normal(ky, (B, N_PTS, 3), jnp.float32)

    mod = InterpolationModMLP(InterpolationEnergy(), kp)

    losses = mod.forward_batched(shape_x, shape_y)
    jax.block_until_ready(losses)

    for b in range(B):
        ref = _reference_loss(mod, shape_x[b], shape_y[b])
        assert jnp.isfinite(losses[b])
        assert jnp.allclose(losses[b], ref, rtol=5e-3, atol=1e-3), (b, losses[b], ref)

    # single-pair API stays available and consistent with the batched path
    single = mod.forward(shape_x[0], shape_y[0])
    jax.block_until_ready(single)
    assert jnp.allclose(single, losses[0], rtol=1e-5, atol=1e-5), (single, losses[0])

    print("KERNEL_OK")
</pallas_src>

<mosaic_0001>
module attributes {stable_mosaic.version = 11 : i64} {
  func.func @_fused_kernel(%arg0: i32, %arg1: memref<1x24x128xf32, #tpu.memory_space<vmem>>, %arg2: memref<40x128xf32, #tpu.memory_space<vmem>>, %arg3: memref<1x1x1xf32, #tpu.memory_space<vmem>>) attributes {dimension_semantics = [#tpu.dimension_semantics<parallel>], iteration_bounds = array<i64: 2>, scalar_prefetch = 0 : i64, scratch_operands = 0 : i64, tpu.core_type = #tpu.core_type<tc>, window_params = [{transform_indices = @transform_0, window_bounds = array<i64: 1, 24, 128>}, {pipeline_mode = #tpu.pipeline_mode<synchronous>, transform_indices = @transform_1, window_bounds = array<i64: 40, 128>}, {transform_indices = @transform_2, window_bounds = array<i64: 1, 1, 1>}]} {
    %c0 = arith.constant 0 : index
    %c0_0 = arith.constant 0 : index
    %c0_1 = arith.constant 0 : index
    %0 = vector.load %arg1[%c0, %c0_0, %c0_1] : memref<1x24x128xf32, #tpu.memory_space<vmem>>, vector<1x8x128xf32>
    %1 = vector.shape_cast %0 : vector<1x8x128xf32> to vector<8x128xf32>
    %c0_2 = arith.constant 0 : index
    %c8 = arith.constant 8 : index
    %c0_3 = arith.constant 0 : index
    %2 = vector.load %arg1[%c0_2, %c8, %c0_3] : memref<1x24x128xf32, #tpu.memory_space<vmem>>, vector<1x8x128xf32>
    %3 = vector.shape_cast %2 : vector<1x8x128xf32> to vector<8x128xf32>
    %c0_4 = arith.constant 0 : index
    %c16 = arith.constant 16 : index
    %c0_5 = arith.constant 0 : index
    %4 = vector.load %arg1[%c0_4, %c16, %c0_5] : memref<1x24x128xf32, #tpu.memory_space<vmem>>, vector<1x8x128xf32>
    %5 = vector.shape_cast %4 : vector<1x8x128xf32> to vector<8x128xf32>
    %c0_6 = arith.constant 0 : index
    %c0_7 = arith.constant 0 : index
    %6 = vector.load %arg2[%c0_6, %c0_7] : memref<40x128xf32, #tpu.memory_space<vmem>>, vector<32x8xf32>
    %c0_8 = arith.constant 0 : index
    %c8_9 = arith.constant 8 : index
    %7 = vector.load %arg2[%c0_8, %c8_9] : memref<40x128xf32, #tpu.memory_space<vmem>>, vector<32x1xf32>
    %c0_10 = arith.constant 0 : index
    %c6 = arith.constant 6 : index
    %8 = vector.load %arg2[%c0_10, %c6] : memref<40x128xf32, #tpu.memory_space<vmem>>, vector<32x1xf32>
    %c32 = arith.constant 32 : index
    %c0_11 = arith.constant 0 : index
    %9 = vector.load %arg2[%c32, %c0_11] : memref<40x128xf32, #tpu.memory_space<vmem>>, vector<8x32xf32>
    %c32_12 = arith.constant 32 : index
    %c32_13 = arith.constant 32 : index
    %10 = vector.load %arg2[%c32_12, %c32_13] : memref<40x128xf32, #tpu.memory_space<vmem>>, vector<8x1xf32>
    %cst = arith.constant dense<0.000000e+00> : vector<32x128xf32>
    %11 = tpu.matmul %6, %5, %cst {dimension_numbers = #tpu.dot_dimension_numbers<[1], [0], [0], [1], [0, 0, 1, 1], [], []>} : vector<32x8xf32>, vector<8x128xf32>, vector<32x128xf32> -> vector<32x128xf32>
    %12 = vector.broadcast %7 : vector<32x1xf32> to vector<32x128xf32>
    %13 = arith.addf %11, %12 : vector<32x128xf32>
    %cst_14 = arith.constant 2.000000e-01 : f32
    %14 = vector.broadcast %cst_14 : f32 to vector<32x1xf32>
    %15 = arith.mulf %14, %8 : vector<32x1xf32>
    %16 = vector.broadcast %15 : vector<32x1xf32> to vector<32x128xf32>
    %17 = arith.addf %13, %16 : vector<32x128xf32>
    %cst_15 = arith.constant 4.000000e-01 : f32
    %18 = vector.broadcast %cst_15 : f32 to vector<32x1xf32>
    %19 = arith.mulf %18, %8 : vector<32x1xf32>
    %20 = vector.broadcast %19 : vector<32x1xf32> to vector<32x128xf32>
    %21 = arith.addf %13, %20 : vector<32x128xf32>
    %cst_16 = arith.constant 6.000000e-01 : f32
    %22 = vector.broadcast %cst_16 : f32 to vector<32x1xf32>
    %23 = arith.mulf %22, %8 : vector<32x1xf32>
    %24 = vector.broadcast %23 : vector<32x1xf32> to vector<32x128xf32>
    %25 = arith.addf %13, %24 : vector<32x128xf32>
    %cst_17 = arith.constant 8.000000e-01 : f32
    %26 = vector.broadcast %cst_17 : f32 to vector<32x1xf32>
    %27 = arith.mulf %26, %8 : vector<32x1xf32>
    %28 = vector.broadcast %27 : vector<32x1xf32> to vector<32x128xf32>
    %29 = arith.addf %13, %28 : vector<32x128xf32>
    %30 = tpu.concatenate %17, %21, %25, %29 in 1 : vector<32x128xf32>, vector<32x128xf32>, vector<32x128xf32>, vector<32x128xf32> -> vector<32x512xf32>
    %cst_18 = arith.constant 0.000000e+00 : f32
    %31 = vector.broadcast %cst_18 : f32 to vector<32x512xf32>
    %32 = arith.maximumf %30, %31 : vector<32x512xf32>
    %cst_19 = arith.constant dense<0.000000e+00> : vector<8x512xf32>
    %33 = tpu.matmul %9, %32, %cst_19 {dimension_numbers = #tpu.dot_dimension_numbers<[1], [0], [0], [1], [0, 0, 1, 1], [], []>} : vector<8x32xf32>, vector<32x512xf32>, vector<8x512xf32> -> vector<8x512xf32>
    %34 = vector.broadcast %10 : vector<8x1xf32> to vector<8x512xf32>
    %35 = arith.addf %33, %34 : vector<8x512xf32>
    %36 = tpu.iota {dimensions = array<i32: 0>} : vector<8x128xi32>
    %c6_i32 = arith.constant 6 : i32
    %37 = vector.broadcast %c6_i32 : i32 to vector<8x128xi32>
    %38 = arith.cmpi eq, %36, %37 : vector<8x128xi32>
    %cst_20 = arith.constant 1.000000e+00 : f32
    %cst_21 = arith.constant 0.000000e+00 : f32
    %39 = vector.broadcast %cst_20 : f32 to vector<8x128xf32>
    %40 = vector.broadcast %cst_21 : f32 to vector<8x128xf32>
    %41 = arith.select %38, %39, %40 : vector<8x128xi1>, vector<8x128xf32>
    %c7_i32 = arith.constant 7 : i32
    %42 = vector.broadcast %c7_i32 : i32 to vector<8x128xi32>
    %43 = arith.cmpi eq, %36, %42 : vector<8x128xi32>
    %cst_22 = arith.constant 1.000000e+00 : f32
    %cst_23 = arith.constant 0.000000e+00 : f32
    %44 = vector.broadcast %cst_22 : f32 to vector<8x128xf32>
    %45 = vector.broadcast %cst_23 : f32 to vector<8x128xf32>
    %46 = arith.select %43, %44, %45 : vector<8x128xi1>, vector<8x128xf32>
    %cst_24 = arith.constant 0.000000e+00 : f32
    %47 = vector.broadcast %cst_24 : f32 to vector<128x128xf32>
    %48 = arith.mulf %1, %1 : vector<8x128xf32>
    %cst_25 = arith.constant dense<0.000000e+00> : vector<128xf32>
    %49 = vector.multi_reduction <add>, %48, %cst_25 [0] : vector<8x128xf32> to vector<128xf32>
    %50 = vector.shape_cast %49 : vector<128xf32> to vector<1x128xf32>
    %51 = arith.addf %1, %41 : vector<8x128xf32>
    %52 = vector.broadcast %50 : vector<1x128xf32> to vector<8x128xf32>
    %53 = arith.mulf %46, %52 : vector<8x128xf32>
    %54 = arith.addf %51, %53 : vector<8x128xf32>
    %55 = vector.broadcast %50 : vector<1x128xf32> to vector<8x128xf32>
    %56 = arith.mulf %41, %55 : vector<8x128xf32>
    %57 = arith.addf %56, %46 : vector<8x128xf32>
    %cst_26 = arith.constant 2.000000e+00 : f32
    %58 = vector.broadcast %cst_26 : f32 to vector<8x128xf32>
    %59 = arith.mulf %58, %1 : vector<8x128xf32>
    %60 = arith.subf %57, %59 : vector<8x128xf32>
    %cst_27 = arith.constant dense<0.000000e+00> : vector<128x128xf32>
    %61 = tpu.matmul %54, %60, %cst_27 {dimension_numbers = #tpu.dot_dimension_numbers<[0], [0], [1], [1], [0, 1, 1, 1], [], []>} : vector<8x128xf32>, vector<8x128xf32>, vector<128x128xf32> -> vector<128x128xf32>
    %cst_28 = arith.constant 8.000000e-01 : f32
    %62 = vector.broadcast %cst_28 : f32 to vector<8x128xf32>
    %63 = arith.mulf %62, %1 : vector<8x128xf32>
    %cst_29 = arith.constant 2.000000e-01 : f32
    %64 = vector.broadcast %cst_29 : f32 to vector<8x128xf32>
    %65 = arith.mulf %64, %3 : vector<8x128xf32>
    %66 = arith.addf %63, %65 : vector<8x128xf32>
    %67 = vector.extract_strided_slice %35 {offsets = [0, 0], sizes = [8, 128], strides = [1, 1]} : vector<8x512xf32> to vector<8x128xf32>
    %68 = arith.addf %66, %67 : vector<8x128xf32>
    %69 = arith.mulf %68, %68 : vector<8x128xf32>
    %cst_30 = arith.constant dense<0.000000e+00> : vector<128xf32>
    %70 = vector.multi_reduction <add>, %69, %cst_30 [0] : vector<8x128xf32> to vector<128xf32>
    %71 = vector.shape_cast %70 : vector<128xf32> to vector<1x128xf32>
    %72 = arith.addf %68, %41 : vector<8x128xf32>
    %73 = vector.broadcast %71 : vector<1x128xf32> to vector<8x128xf32>
    %74 = arith.mulf %46, %73 : vector<8x128xf32>
    %75 = arith.addf %72, %74 : vector<8x128xf32>
    %76 = vector.broadcast %71 : vector<1x128xf32> to vector<8x128xf32>
    %77 = arith.mulf %41, %76 : vector<8x128xf32>
    %78 = arith.addf %77, %46 : vector<8x128xf32>
    %cst_31 = arith.constant 2.000000e+00 : f32
    %79 = vector.broadcast %cst_31 : f32 to vector<8x128xf32>
    %80 = arith.mulf %79, %68 : vector<8x128xf32>
    %81 = arith.subf %78, %80 : vector<8x128xf32>
    %cst_32 = arith.constant dense<0.000000e+00> : vector<128x128xf32>
    %82 = tpu.matmul %75, %81, %cst_32 {dimension_numbers = #tpu.dot_dimension_numbers<[0], [0], [1], [1], [0, 1, 1, 1], [], []>} : vector<8x128xf32>, vector<8x128xf32>, vector<128x128xf32> -> vector<128x128xf32>
    %83 = arith.subf %61, %82 : vector<128x128xf32>
    %84 = arith.mulf %83, %83 : vector<128x128xf32>
    %85 = arith.addf %47, %84 : vector<128x128xf32>
    %cst_33 = arith.constant 6.000000e-01 : f32
    %86 = vector.broadcast %cst_33 : f32 to vector<8x128xf32>
    %87 = arith.mulf %86, %1 : vector<8x128xf32>
    %cst_34 = arith.constant 4.000000e-01 : f32
    %88 = vector.broadcast %cst_34 : f32 to vector<8x128xf32>
    %89 = arith.mulf %88, %3 : vector<8x128xf32>
    %90 = arith.addf %87, %89 : vector<8x128xf32>
    %91 = vector.extract_strided_slice %35 {offsets = [0, 128], sizes = [8, 128], strides = [1, 1]} : vector<8x512xf32> to vector<8x128xf32>
    %92 = arith.addf %90, %91 : vector<8x128xf32>
    %93 = arith.mulf %92, %92 : vector<8x128xf32>
    %cst_35 = arith.constant dense<0.000000e+00> : vector<128xf32>
    %94 = vector.multi_reduction <add>, %93, %cst_35 [0] : vector<8x128xf32> to vector<128xf32>
    %95 = vector.shape_cast %94 : vector<128xf32> to vector<1x128xf32>
    %96 = arith.addf %92, %41 : vector<8x128xf32>
    %97 = vector.broadcast %95 : vector<1x128xf32> to vector<8x128xf32>
    %98 = arith.mulf %46, %97 : vector<8x128xf32>
    %99 = arith.addf %96, %98 : vector<8x128xf32>
    %100 = vector.broadcast %95 : vector<1x128xf32> to vector<8x128xf32>
    %101 = arith.mulf %41, %100 : vector<8x128xf32>
    %102 = arith.addf %101, %46 : vector<8x128xf32>
    %cst_36 = arith.constant 2.000000e+00 : f32
    %103 = vector.broadcast %cst_36 : f32 to vector<8x128xf32>
    %104 = arith.mulf %103, %92 : vector<8x128xf32>
    %105 = arith.subf %102, %104 : vector<8x128xf32>
    %cst_37 = arith.constant dense<0.000000e+00> : vector<128x128xf32>
    %106 = tpu.matmul %99, %105, %cst_37 {dimension_numbers = #tpu.dot_dimension_numbers<[0], [0], [1], [1], [0, 1, 1, 1], [], []>} : vector<8x128xf32>, vector<8x128xf32>, vector<128x128xf32> -> vector<128x128xf32>
    %107 = arith.subf %82, %106 : vector<128x128xf32>
    %108 = arith.mulf %107, %107 : vector<128x128xf32>
    %109 = arith.addf %85, %108 : vector<128x128xf32>
    %cst_38 = arith.constant 4.000000e-01 : f32
    %110 = vector.broadcast %cst_38 : f32 to vector<8x128xf32>
    %111 = arith.mulf %110, %1 : vector<8x128xf32>
    %cst_39 = arith.constant 6.000000e-01 : f32
    %112 = vector.broadcast %cst_39 : f32 to vector<8x128xf32>
    %113 = arith.mulf %112, %3 : vector<8x128xf32>
    %114 = arith.addf %111, %113 : vector<8x128xf32>
    %115 = vector.extract_strided_slice %35 {offsets = [0, 256], sizes = [8, 128], strides = [1, 1]} : vector<8x512xf32> to vector<8x128xf32>
    %116 = arith.addf %114, %115 : vector<8x128xf32>
    %117 = arith.mulf %116, %116 : vector<8x128xf32>
    %cst_40 = arith.constant dense<0.000000e+00> : vector<128xf32>
    %118 = vector.multi_reduction <add>, %117, %cst_40 [0] : vector<8x128xf32> to vector<128xf32>
    %119 = vector.shape_cast %118 : vector<128xf32> to vector<1x128xf32>
    %120 = arith.addf %116, %41 : vector<8x128xf32>
    %121 = vector.broadcast %119 : vector<1x128xf32> to vector<8x128xf32>
    %122 = arith.mulf %46, %121 : vector<8x128xf32>
    %123 = arith.addf %120, %122 : vector<8x128xf32>
    %124 = vector.broadcast %119 : vector<1x128xf32> to vector<8x128xf32>
    %125 = arith.mulf %41, %124 : vector<8x128xf32>
    %126 = arith.addf %125, %46 : vector<8x128xf32>
    %cst_41 = arith.constant 2.000000e+00 : f32
    %127 = vector.broadcast %cst_41 : f32 to vector<8x128xf32>
    %128 = arith.mulf %127, %116 : vector<8x128xf32>
    %129 = arith.subf %126, %128 : vector<8x128xf32>
    %cst_42 = arith.constant dense<0.000000e+00> : vector<128x128xf32>
    %130 = tpu.matmul %123, %129, %cst_42 {dimension_numbers = #tpu.dot_dimension_numbers<[0], [0], [1], [1], [0, 1, 1, 1], [], []>} : vector<8x128xf32>, vector<8x128xf32>, vector<128x128xf32> -> vector<128x128xf32>
    %131 = arith.subf %106, %130 : vector<128x128xf32>
    %132 = arith.mulf %131, %131 : vector<128x128xf32>
    %133 = arith.addf %109, %132 : vector<128x128xf32>
    %cst_43 = arith.constant 2.000000e-01 : f32
    %134 = vector.broadcast %cst_43 : f32 to vector<8x128xf32>
    %135 = arith.mulf %134, %1 : vector<8x128xf32>
    %cst_44 = arith.constant 8.000000e-01 : f32
    %136 = vector.broadcast %cst_44 : f32 to vector<8x128xf32>
    %137 = arith.mulf %136, %3 : vector<8x128xf32>
    %138 = arith.addf %135, %137 : vector<8x128xf32>
    %139 = vector.extract_strided_slice %35 {offsets = [0, 384], sizes = [8, 128], strides = [1, 1]} : vector<8x512xf32> to vector<8x128xf32>
    %140 = arith.addf %138, %139 : vector<8x128xf32>
    %141 = arith.mulf %140, %140 : vector<8x128xf32>
    %cst_45 = arith.constant dense<0.000000e+00> : vector<128xf32>
    %142 = vector.multi_reduction <add>, %141, %cst_45 [0] : vector<8x128xf32> to vector<128xf32>
    %143 = vector.shape_cast %142 : vector<128xf32> to vector<1x128xf32>
    %144 = arith.addf %140, %41 : vector<8x128xf32>
    %145 = vector.broadcast %143 : vector<1x128xf32> to vector<8x128xf32>
    %146 = arith.mulf %46, %145 : vector<8x128xf32>
    %147 = arith.addf %144, %146 : vector<8x128xf32>
    %148 = vector.broadcast %143 : vector<1x128xf32> to vector<8x128xf32>
    %149 = arith.mulf %41, %148 : vector<8x128xf32>
    %150 = arith.addf %149, %46 : vector<8x128xf32>
    %cst_46 = arith.constant 2.000000e+00 : f32
    %151 = vector.broadcast %cst_46 : f32 to vector<8x128xf32>
    %152 = arith.mulf %151, %140 : vector<8x128xf32>
    %153 = arith.subf %150, %152 : vector<8x128xf32>
    %cst_47 = arith.constant dense<0.000000e+00> : vector<128x128xf32>
    %154 = tpu.matmul %147, %153, %cst_47 {dimension_numbers = #tpu.dot_dimension_numbers<[0], [0], [1], [1], [0, 1, 1, 1], [], []>} : vector<8x128xf32>, vector<8x128xf32>, vector<128x128xf32> -> vector<128x128xf32>
    %155 = arith.subf %130, %154 : vector<128x128xf32>
    %156 = arith.mulf %155, %155 : vector<128x128xf32>
    %157 = arith.addf %133, %156 : vector<128x128xf32>
    %158 = arith.mulf %3, %3 : vector<8x128xf32>
    %cst_48 = arith.constant dense<0.000000e+00> : vector<128xf32>
    %159 = vector.multi_reduction <add>, %158, %cst_48 [0] : vector<8x128xf32> to vector<128xf32>
    %160 = vector.shape_cast %159 : vector<128xf32> to vector<1x128xf32>
    %161 = arith.addf %3, %41 : vector<8x128xf32>
    %162 = vector.broadcast %160 : vector<1x128xf32> to vector<8x128xf32>
    %163 = arith.mulf %46, %162 : vector<8x128xf32>
    %164 = arith.addf %161, %163 : vector<8x128xf32>
    %165 = vector.broadcast %160 : vector<1x128xf32> to vector<8x128xf32>
    %166 = arith.mulf %41, %165 : vector<8x128xf32>
    %167 = arith.addf %166, %46 : vector<8x128xf32>
    %cst_49 = arith.constant 2.000000e+00 : f32
    %168 = vector.broadcast %cst_49 : f32 to vector<8x128xf32>
    %169 = arith.mulf %168, %3 : vector<8x128xf32>
    %170 = arith.subf %167, %169 : vector<8x128xf32>
    %cst_50 = arith.constant dense<0.000000e+00> : vector<128x128xf32>
    %171 = tpu.matmul %164, %170, %cst_50 {dimension_numbers = #tpu.dot_dimension_numbers<[0], [0], [1], [1], [0, 1, 1, 1], [], []>} : vector<8x128xf32>, vector<8x128xf32>, vector<128x128xf32> -> vector<128x128xf32>
    %172 = arith.subf %154, %171 : vector<128x128xf32>
    %173 = arith.mulf %172, %172 : vector<128x128xf32>
    %174 = arith.addf %157, %173 : vector<128x128xf32>
    %175 = vector.shape_cast %174 : vector<128x128xf32> to vector<1x128x128xf32>
    %cst_51 = arith.constant dense<0.000000e+00> : vector<1xf32>
    %176 = vector.multi_reduction <add>, %175, %cst_51 [1, 2] : vector<1x128x128xf32> to vector<1xf32>
    %177 = vector.shape_cast %176 : vector<1xf32> to vector<1x1x1xf32>
    %178 = vector.extract %177[0, 0, 0] : f32 from vector<1x1x1xf32>
    %179 = vector.broadcast %178 : f32 to vector<1x1xf32>
    %c0_52 = arith.constant 0 : index
    %c0_53 = arith.constant 0 : index
    %c0_54 = arith.constant 0 : index
    %180 = vector.load %arg3[%c0_52, %c0_53, %c0_54] : memref<1x1x1xf32, #tpu.memory_space<vmem>>, vector<1x1x1xf32>
    %181 = vector.shape_cast %180 : vector<1x1x1xf32> to vector<1x1xf32>
    %182 = vector.shape_cast %179 : vector<1x1xf32> to vector<1x1x1xf32>
    tpu.vector_store %arg3[%c0_52, %c0_53, %c0_54], %182 {strides = array<i32>} : memref<1x1x1xf32, #tpu.memory_space<vmem>>, vector<1x1x1xf32>,
    return
  }
  func.func @transform_0(%arg0: i32) -> (i32, i32, i32) {
    %c0_i32 = arith.constant 0 : i32
    %c0_i32_0 = arith.constant 0 : i32
    %c0_i32_1 = arith.constant 0 : i32
    return %arg0, %c0_i32, %c0_i32_0 : i32, i32, i32
  }
  func.func @transform_1(%arg0: i32) -> (i32, i32) {
    %c0_i32 = arith.constant 0 : i32
    %c0_i32_0 = arith.constant 0 : i32
    %c0_i32_1 = arith.constant 0 : i32
    return %c0_i32, %c0_i32_0 : i32, i32
  }
  func.func @transform_2(%arg0: i32) -> (i32, i32, i32) {
    %c0_i32 = arith.constant 0 : i32
    %c0_i32_0 = arith.constant 0 : i32
    %c0_i32_1 = arith.constant 0 : i32
    return %arg0, %c0_i32, %c0_i32_0 : i32, i32, i32
  }
}

</mosaic_0001>

<bundles_post_ra>
// kernel: tpu_custom_call.1
= control target key start
LH: loop header
LB: loop body
LE: loop exit
PB: predicated region body
PF: predicated region fallthrough
CT: control target
= control target key end

     0   :  { %7 = vsyncpa [#allocation3], 0  ;;  %s3542_s0 = inlined_call_operand.hbm [shape: f32[2,24,128], index: 0, kind: input, shape index: {}]   ;;  %s3543_s1 = inlined_call_operand.hbm [shape: f32[40,128], index: 1, kind: input, shape index: {}]   ;;  %s3544_s2 = inlined_call_operand.vmem [shape: f32[2,1,1], index: 2, kind: output, shape index: {}]  }
   0x1   :  { %9 = vsyncpa [#allocation3 + $0x1], 0 }
   0x2   :  { %10 = vsyncpa [#allocation5], 0  ;;  %s2954_s9 = smov 0   ;;  %s2956_s10 = smov 0  }
   0x3   :  { %s2958_s11 = smov 0   ;;  %s2960_s12 = smov 0  }
   0x4 LB: > { %s2973_s13 = sadd.s32 4294967295, %s2929_s12   ;;  %p36_p0 = scmp.ne.s32.totalorder %s2921_s10, %s2917_s9  ;;  %s2929_s12 = sphi %s2960_s12, %s3559_s12   ;;  %s2925_s11 = sphi %s2958_s11, %s3558_s11   ;;  %s2921_s10 = sphi %s2956_s10, %s3557_s10   ;;  %s2917_s9 = sphi %s2954_s9, %s3556_s9  }
   0x5   : > { %p3545_p1 = scmp.eq.s32.totalorder %s2973_s13, 0  ;;  %p2368_p2 = scmp.ge.s32.totalorder %s2929_s12, 1 }
   0x6   : > { %p94_p3 = scmp.lt.s32.totalorder %s2929_s12, 3  ;;  %s2931_s16 = smov [#allocation4]  }
   0x7   : > { %p2981_p4 = por %p3545_p1, %p36_p0  ;;  %s106_s17 = sshll.u32 %s2931_s16, 4  ;;  %s107_s17 = int_to_ptr.vmem [resolvable:$true] %s106_s17 }
   0x8   : > { %p2985_p5 = pnand %p2368_p2, %p94_p3  ;;  %s2998_s19 = sadd.s32 1, %s2929_s12  }
   0x9   : > { %s3548_s14 = scalar_select %p2981_p4, 1, 0 }
   0xa   : > { %s3549_s15 = scalar_select %p2985_p5, 1, 0 }
   0xb   : > { %p2776_p6 = pneg %p2985_p5  ;;  %s23_s20 = sadd.s32 1, %s2925_s11 }
   0xc   : > { %s20_s21 = ssub.s32 %s2929_s12, %s2998_s19  ;;  %s2833_s24 = scalar_lea.hbm %s3543_s1, 640 }
   0xd   : > { %p2993_p7 = pnand %p2776_p6, %p3545_p1  ;;  %p2834_p8 = scmp.ne.s32.totalorder %s3543_s1, %s2833_s24 }
   0xe   : > { %p2840_p12 = scmp.lt.u32.totalorder %s2833_s24, %s3543_s1 }
   0xf   : > { %p2835_p9 = pneg %p2993_p7 }
  0x11   : > { %p2836_p10 = pnand %p2835_p9, %p2834_p8 }
  0x13   : > { %p2837_p11 = pneg %p2836_p10 }
  0x15   : > { %p2842_p13 = pnand %p2840_p12, %p2837_p11 }
  0x17   : > { %2845 = shalt.err (!%p2842_p13)
}
  0x18   : > { %s2846_s29 = scalar_lea.vmem %s107_s17, 640  ;;  %p2854_p6 = scmp.lt.s32.totalorder %s107_s17, %s107_s17 }
  0x19   : > { %p2847_p0 = scmp.ne.s32.totalorder %s107_s17, %s2846_s29  ;;  %p2855_p1 = scmp.lt.s32.totalorder %s2846_s29, %s2846_s29 }
  0x1b   : > { %p2849_p2 = pnand %p2847_p0, %p2835_p9  ;;  %p2856_p4 = por %p2855_p1, %p2854_p6 }
  0x1d   : > { %p2850_p3 = pneg %p2849_p2 }
  0x1f   : > { %p2857_p5 = pnand %p2856_p4, %p2850_p3 }
  0x21   : > { %2860 = shalt.err (!%p2857_p5)
}
  0x22   : > { %s2932_s30 = smov 128   ;;  %s2933_s3 = smov 8  }
  0x23   : > { %2779 = dma.hbm_to_vmem [thread:$0]  (!%p2993_p7), %s3543_s1, 640, %s107_s17, [#allocation5], %s2932_s30, %s2932_s30, %s2933_s3  }
  0x24   : > { %p21_p1 = scmp.eq.s32.totalorder %s20_s21, 0  ;;  %p30_p4 = scmp.ne.s32.totalorder %s2925_s11, %s2921_s10 }
  0x25   : > { %p31_p5 = scmp.eq.s32.totalorder %s2929_s12, 0  ;;  %p2785_p8 = scmp.lt.s32.totalorder %s2929_s12, 2 }
  0x26   : > { %s3027_s6 = scalar_select %p21_p1, %s2925_s11, %s23_s20  }
  0x27   : > { %p32_p9 = por %p31_p5, %p30_p4  ;;  %s120_s7 = sand.u32 1, %s2925_s11  }
  0x28   : > { %s2765_s8 = smul.u32 24, %s120_s7  ;;  %s2866_s26 = scalar_lea.hbm %s3542_s0, 768 }
  0x29   : > { %s2766_s9 = smul.u32 384, %s2929_s12  ;;  %p3031_p10 = pnand %p2785_p8, %p32_p9 }
  0x2a   : > { %s124_s20 = scalar_lea.vmem [#allocation2], %s2765_s8  ;;  %s3042_s12 = scalar_lea.sflag [#allocation3], %s120_s7 }
  0x2b   : > { %s3038_s17 = scalar_lea.hbm %s3542_s0, %s2766_s9  ;;  %s131_s21 = sshll.u32 %s124_s20, 4  ;;  %s3040_s21 = int_to_ptr.vmem [resolvable:$true] %s131_s21 }
  0x2c   : > { %s2861_s23 = scalar_lea.hbm %s3038_s17, 384  ;;  %p2863_p11 = pneg %p3031_p10 }
  0x2d   : > { %p2862_p7 = scmp.ne.s32.totalorder %s3038_s17, %s2861_s23  ;;  %p2867_p0 = scmp.lt.u32.totalorder %s3038_s17, %s3542_s0 }
  0x2e   : > { %p2868_p2 = scmp.lt.u32.totalorder %s2866_s26, %s2861_s23  ;;  %p2870_p6 = scmp.lt.u32.totalorder %s2861_s23, %s3038_s17 }
  0x2f   : > { %p2864_p12 = pnand %p2863_p11, %p2862_p7 }
  0x30   : > { %p2869_p3 = por %p2868_p2, %p2867_p0 }
  0x31   : > { %p2865_p13 = pneg %p2864_p12 }
  0x32   : > { %p2871_p1 = por %p2870_p6, %p2869_p3 }
  0x34   : > { %p2872_p4 = pnand %p2871_p1, %p2865_p13 }
  0x36   : > { %2875 = shalt.err (!%p2872_p4)
}
  0x37   : > { %s2876_s29 = scalar_lea.vmem %s3040_s21, 384  ;;  %s2934_s4 = smov [#allocation2]  }
  0x38   : > { %p2877_p5 = scmp.ne.s32.totalorder %s3040_s21, %s2876_s29  ;;  %s2881_s5 = sshll.u32 %s2934_s4, 4  ;;  %s2882_s5 = int_to_ptr.vmem [resolvable:$false] %s2881_s5 }
  0x39   : > { %s2883_s7 = scalar_lea.vmem %s2882_s5, 768  ;;  %p2884_p7 = scmp.lt.s32.totalorder %s3040_s21, %s2882_s5 }
  0x3a   : > { %p2879_p8 = pnand %p2877_p5, %p2863_p11  ;;  %p2885_p12 = scmp.lt.s32.totalorder %s2883_s7, %s2876_s29 }
  0x3c   : > { %p2880_p9 = pneg %p2879_p8  ;;  %p2886_p0 = por %p2885_p12, %p2884_p7 }
  0x3e   : > { %p2887_p2 = pnand %p2886_p0, %p2880_p9 }
  0x40   : > { %2890 = shalt.err (!%p2887_p2)
}
  0x41   : > { %2783 = dma.hbm_to_vmem [thread:$0]  (!%p3031_p10), %s3038_s17, 384, %s3040_s21, %s3042_s12, %s2932_s30, %s2932_s30, %s2933_s3  }
  0x42   : > { %p3552_p11 = scmp.ne.s32.totalorder %s3549_s15, 0 }
  0x43   : > { %s145_s8 = sand.u32 (!%p3552_p11), 1, %s2921_s10   ;;  %p3553_p13 = scmp.ne.s32.totalorder (!%p3552_p11), %s3548_s14, 0 }
  0x44   : > { %143 = sbr.rel (%p3552_p11) target bundleno = 1294 (0x50e), region = 28  ;;  %s146_s18 = scalar_lea.sflag (!%p3552_p11), [#allocation3], %s145_s8 }
  0x45   : > { %s2767_s9 = smul.u32 (!%p3552_p11), 24, %s145_s8 }
  0x47   : > { %s3076_s22 = scalar_lea.vmem (!%p3552_p11), [#allocation2], %s2767_s9 }
  0x4b   : > { %2908 = dma.done.wait (%p3553_p13), %s146_s18, 384  }
  0x4c   : > { %2910 = vsyncadd (%p3553_p13), %s146_s18, 4294966912  ;;  %p3554_p3 = scmp.eq.s32.totalorder %s2973_s13, 0 }
  0x4e   : > { %2912 = dma.done.wait (%p3554_p3), [#allocation5], 640   ;;  %p3555_p10 = pmov %p3554_p3 }
  0x4f   : > { %v2935_v0 = vmov 6   ;;  %v2936_v1 = vmov 8   ;;  %vm203_vm0 = vcmask 64512   ;;  %v177_v2 = vld [vmem:[%s3076_s22 + $0x10] sm:$0xff]  ;;  %v179_v4 = vld [vmem:[#allocation4 + $0x8] sm:$0xff]  ;;  %v180_v5 = vld [vmem:[#allocation4 + $0x10] sm:$0xff]  ;;  %v575_v24 = vlaneseq }
  0x50   : > { %2914 = vsyncadd (%p3555_p10), [#allocation5], 4294966656  ;;  %2827 = vset.pattern.permute.xlu1 %v2935_v0  ;;  %2826 = vset.pattern.permute.xlu0 %v2936_v1  ;;  %v178_v3 = vld [vmem:[#allocation4] sm:$0xff]  ;;  %v326_v7 = vmul.f32 0.4, %v179_v4  ;;  %v181_v8 = vld [vmem:[#allocation4 + $0x18] sm:$0xff] }
  0x51   : > { %2585 = vmatprep.subr.mxu0 %v177_v2  ;;  %2587 = vmatprep.mubr.msk.f32.mxu0 %vm203_vm0, %v178_v3  ;;  %v325_v6 = vmul.f32 0.4, %v178_v3  ;;  %v298_v9 = vmul.f32 0.2, %v179_v4  ;;  %v297_v10 = vmul.f32 0.2, %v178_v3 }
  0x52   : > { %2586 = vmatpush3.msra.mxu0 %v177_v2  ;;  %185 = vperm.xlu0 %2826, %v178_v3   ;;  %v299_v11 = vmul.f32 0.2, %v180_v5  ;;  %v327_v12 = vmul.f32 0.4, %v180_v5  ;;  %v382_v13 = vmul.f32 0.8, %v179_v4 }
  0x53   : > { %2588 = vmatmul.mubr.msk.f32.vlgmr.msra.gmra.mrb[0].mxu0 %vm203_vm0, %v179_v4  ;;  %331 = vperm.xlu1 %2827, %v325_v6   ;;  %v328_v14 = vmul.f32 0.4, %v181_v8  ;;  %v354_v15 = vmul.f32 0.6, %v179_v4  ;;  %v300_v16 = vmul.f32 0.2, %v181_v8 }
  0x54   : > { %2590 = vmatprep.mubr.msk.f32.mxu0 %vm203_vm0, %v180_v5  ;;  %v384_v17 = vmul.f32 0.8, %v181_v8  ;;  %v381_v18 = vmul.f32 0.8, %v178_v3  ;;  %v356_v19 = vmul.f32 0.6, %v181_v8 }
  0x55   : > { %v353_v20 = vmul.f32 0.6, %v178_v3  ;;  %v383_v21 = vmul.f32 0.8, %v180_v5  ;;  %v355_v22 = vmul.f32 0.6, %v180_v5 }
  0x56   : > { %190 = vperm.xlu0 %2826, %v179_v4   ;;  %v2937_v23 = vmov 0.0   ;;  %v3092_v25 = vld [vmem:[%s3076_s22] sm:$0xff]  ;;  %v3094_v26 = vld [vmem:[#allocation4 + $0x20] sm:$0xff]  ;;  %v2938_v27 = vmov 32   ;;  %v576_v29 = vshrl.u32 %v575_v24, 7  ;;  %vm430_vm3 = vcmask 261120  }
  0x57   : > { %2591 = vmatmul.mubr.msk.f32.gmra.mrb[2].mxu0 %vm203_vm0, %v181_v8  ;;  %336 = vperm.xlu1 %2827, %v326_v7   ;;  %v581_v28 = vmul.f32 %v3092_v25, %v3092_v25  ;;  %p172_p6 = scmp.lt.s32.totalorder %s2973_s13, 1  ;;  %vm2296_vm4 = vcmask 0  }
  0x58   : > { %497 = vmatprep.mubr.f32.mxu1 %v2937_v23  ;;  %568 = vmatprep.mubr.f32.mxu0 %v2937_v23  ;;  %vm577_vm1 = vcmp.eq.s32.totalorder %v576_v29, 6  ;;  %vm579_vm2 = vcmp.eq.s32.totalorder %v576_v29, 7 }
  0x59   : > { %v582_v30 = vrot.slane %v581_v28, 4  ;;  %v3100_v34 = vsel %vm577_vm1, 1.0, %v2937_v23  ;;  %v3102_v36 = vsel %vm579_vm2, 1.0, %v2937_v23  ;;  %s3561_s13 = smov (!%p172_p6, %s2973_s13), 1 }
  0x5a   : > { %200 = vperm.xlu0 %2826, %v181_v8   ;;  %v588_v38 = vadd.f32 %v3100_v34, %v3092_v25  ;;  %s174_s30 = scalar_lea.vmem %s3544_s2, %s3561_s13 }
  0x5b   : > { %308 = vperm.xlu1 %2827, %v298_v9   ;;  %v583_v31 = vadd.f32 %v582_v30, %v581_v28 }
  0x5d   : > { %v584_v32 = vrot.slane %v583_v31, 2 }
  0x5e   : > { %2829 = vset.pattern.permute.xlu0 %v2935_v0 }
  0x5f   : > { %2828 = vset.pattern.permute.xlu1 %v2936_v1  ;;  %303 = vperm.xlu0 %2829, %v297_v10   ;;  %v585_v33 = vadd.f32 %v584_v32, %v583_v31 }
  0x60   : > { %195 = vperm.xlu1 %2828, %v180_v5  }
  0x61   : > { %v586_v35 = vrot.slane %v585_v33, 1 }
  0x63   : > { %313 = vperm.xlu0 %2829, %v299_v11   ;;  %v3104_v37 = vadd.f32 %v586_v35, %v585_v33 }
  0x64   : > { %2830 = vset.pattern.permute.xlu1 %v2935_v0 }
  0x65   : > { %341 = vperm.xlu1 %2830, %v327_v12   ;;  %v589_v39 = vmul.f32 %v3104_v37, %v3102_v36 }
  0x67   : > { %392 = vperm.xlu0 %2829, %v382_v13   ;;  %v590_v40 = vadd.f32 %v589_v39, %v588_v38 }
  0x69   : > { %346 = vperm.xlu1 %2830, %v328_v14  }
  0x6b   : > { %364 = vperm.xlu0 %2829, %v354_v15  }
  0x6d   : > { %318 = vperm.xlu1 %2830, %v300_v16  }
  0x6f   : > { %402 = vperm.xlu0 %2829, %v384_v17  }
  0x71   : > { %387 = vperm.xlu1 %2830, %v381_v18  }
  0x73   : > { %374 = vperm.xlu0 %2829, %v356_v19  }
  0x75   : > { %359 = vperm.xlu1 %2830, %v353_v20  }
  0x79   : > { %397 = vperm.xlu1 %2830, %v383_v21  }
  0x7d   : > { %369 = vperm.xlu1 %2830, %v355_v22  }
  0x81   : > { %2831 = vset.pattern.permute.xlu1 %v2938_v27 }
  0x82   : > { %427 = vperm.xlu1 %2831, %v3094_v26  }
  0x91   : > { %595 = vxpose.xlu0.b32.start.end [1/1] (short) %v590_v40, 128 }
  0xd1   : > { %v186_v43 = vpop.permute.xlu0 %185 }
  0xd2   : > { %v332_v41 = vpop.permute.xlu1 %331 }
  0xd5   : > { %v191_v45 = vpop.permute.xlu0 %190 }
  0xd6   : > { %v337_v42 = vpop.permute.xlu1 %336 }
  0xd9   : > { %v201_v47 = vpop.permute.xlu0 %200 }
  0xda   : > { %v309_v44 = vpop.permute.xlu1 %308 }
  0xde   : > { %v304_v49 = vpop.permute.xlu0 %303 }
  0xdf   : > { %v196_v46 = vpop.permute.xlu1 %195 }
  0xe2   : > { %v314_v51 = vpop.permute.xlu0 %313 }
  0xe4   : > { %v342_v48 = vpop.permute.xlu1 %341 }
  0xe6   : > { %v393_v53 = vpop.permute.xlu0 %392 }
  0xe8   : > { %v347_v50 = vpop.permute.xlu1 %346 }
  0xea   : > { %v365_v55 = vpop.permute.xlu0 %364 }
  0xec   : > { %v319_v52 = vpop.permute.xlu1 %318 }
  0xee   : > { %v403_v57 = vpop.permute.xlu0 %402 }
  0xf0   : > { %v388_v54 = vpop.permute.xlu1 %387 }
  0xf2   : > { %v375_v14 = vpop.permute.xlu0 %374 }
  0xf4   : > { %v360_v56 = vpop.permute.xlu1 %359 }
  0xf8   : > { %v398_v59 = vpop.permute.xlu1 %397 }
  0xfc   : > { %v370_v18 = vpop.permute.xlu1 %369 }
 0x126   : > { %v2589_v58 = vpop.f32.mrb[0].mxu0 }
 0x127   : > { %v284_v60 = vadd.f32 %v2589_v58, %v191_v45  ;;  %v278_v61 = vpop.f32.mrb[1].mxu0 }
 0x128   : > { %v279_v62 = vadd.f32 %v278_v61, %v186_v43 }
 0x129   : > { %v378_v63 = vadd.f32 %v365_v55, %v284_v60  ;;  %v350_v0 = vadd.f32 %v337_v42, %v284_v60  ;;  %v406_v1 = vadd.f32 %v393_v53, %v284_v60  ;;  %v322_v2 = vadd.f32 %v309_v44, %v284_v60 }
 0x12a   : > { %v377_v3 = vadd.f32 %v360_v56, %v279_v62  ;;  %v2592_v4 = vpop.f32.mrb[2].mxu0  ;;  %v349_v5 = vadd.f32 %v332_v41, %v279_v62  ;;  %v405_v6 = vadd.f32 %v388_v54, %v279_v62  ;;  %v321_v7 = vadd.f32 %v304_v49, %v279_v62 }
 0x12b   : > { %v415_v8 = vmax.f32 %v378_v63, 0.0  ;;  %v294_v9 = vadd.f32 %v2592_v4, %v201_v47  ;;  %v288_v10 = vpop.f32.mrb[3].mxu0  ;;  %v414_v11 = vmax.f32 %v350_v0, 0.0  ;;  %v416_v12 = vmax.f32 %v406_v1, 0.0  ;;  %v3128_v0 = vld [vmem:[%s3076_s22 + $0x8] sm:$0xff] }
 0x12c   : > { %v411_v13 = vmax.f32 %v377_v3, 0.0  ;;  %v289_v15 = vadd.f32 %v288_v10, %v196_v46  ;;  %v410_v16 = vmax.f32 %v349_v5, 0.0  ;;  %v412_v17 = vmax.f32 %v405_v6, 0.0 }
 0x12d   : > { %v380_v19 = vadd.f32 %v375_v14, %v294_v9  ;;  %v409_v20 = vmax.f32 %v321_v7, 0.0  ;;  %v413_v21 = vmax.f32 %v322_v2, 0.0  ;;  %v352_v22 = vadd.f32 %v347_v50, %v294_v9 }
 0x12e   : > { %v379_v23 = vadd.f32 %v370_v18, %v289_v15  ;;  %v2749_v24 = vpack.c.bf16 %v414_v11, %v410_v16  ;;  %v2757_v28 = vpack.c.bf16 %v416_v12, %v412_v17  ;;  %v2759_v29 = vpack.c.bf16 %v415_v8, %v411_v13  ;;  %v428_v11 = vpop.permute.xlu1 %427 }
 0x12f   : > { %v423_v30 = vmax.f32 %v380_v19, 0.0  ;;  %v2751_v31 = vpack.c.bf16 %v413_v21, %v409_v20  ;;  %v351_v32 = vadd.f32 %v342_v48, %v289_v15  ;;  %v422_v33 = vmax.f32 %v352_v22, 0.0 }
 0x130   : > { %v419_v35 = vmax.f32 %v379_v23, 0.0  ;;  %2750 = vmatprep.subr.bf16.mxu1 %v2749_v24  ;;  %2758 = vmatprep.subr.bf16.mxu0 %v2757_v28  ;;  %v407_v38 = vadd.f32 %v398_v59, %v289_v15  ;;  %v408_v39 = vadd.f32 %v403_v57, %v294_v9  ;;  %v323_v40 = vadd.f32 %v314_v51, %v289_v15  ;;  %v611_v51 = vpop.trf.xlu0 }
 0x131   : > { %2752 = vmatpush1.bf16.msra.mxu1 %v2751_v31  ;;  %2760 = vmatpush1.bf16.msra.mxu0 %v2759_v29  ;;  %v418_v41 = vmax.f32 %v351_v32, 0.0  ;;  %v324_v42 = vadd.f32 %v319_v52, %v294_v9  ;;  %v591_v52 = vmul.f32 %v3104_v37, %v3100_v34  ;;  %v593_v54 = vmul.f32 2.0, %v3092_v25 }
 0x132   : > { %v420_v43 = vmax.f32 %v407_v38, 0.0  ;;  %v424_v44 = vmax.f32 %v408_v39, 0.0  ;;  %v417_v45 = vmax.f32 %v323_v40, 0.0  ;;  %v2763_v46 = vpack.c.bf16 %v423_v30, %v419_v35 }
 0x133   : > { %v2753_v47 = vpack.c.bf16 %v422_v33, %v418_v41  ;;  %v421_v49 = vmax.f32 %v324_v42, 0.0  ;;  %v592_v53 = vadd.f32 %v591_v52, %v3102_v36  ;;  %v820_v2 = vmul.f32 0.8, %v3092_v25 }
 0x134   : > { %v2761_v50 = vpack.c.bf16 %v424_v44, %v420_v43  ;;  %v612_v56 = vpop.trf.xlu0  ;;  %v821_v3 = vmul.f32 0.2, %v3128_v0  ;;  %v1402_v4 = vmul.f32 0.4, %v3092_v25  ;;  %v1403_v5 = vmul.f32 0.6, %v3128_v0 }
 0x135   : > { %2754 = vmatprep.subr.bf16.mxu1 %v2753_v47  ;;  %v2755_v48 = vpack.c.bf16 %v421_v49, %v417_v45  ;;  %v594_v55 = vsub.f32 %v592_v53, %v593_v54  ;;  %v1111_v6 = vmul.f32 0.6, %v3092_v25  ;;  %v1112_v7 = vmul.f32 0.4, %v3128_v0 }
 0x136   : > { %2762 = vmatprep.subr.bf16.mxu0 %v2761_v50  ;;  %v1693_v8 = vmul.f32 0.2, %v3092_v25  ;;  %v1694_v9 = vmul.f32 0.8, %v3128_v0  ;;  %v822_v12 = vadd.f32 %v821_v3, %v820_v2  ;;  %v1404_v13 = vadd.f32 %v1403_v5, %v1402_v4 }
 0x137   : > { %2756 = vmatpush1.bf16.msra.mxu1 %v2755_v48  ;;  %2764 = vmatpush1.bf16.msra.mxu0 %v2763_v46  ;;  %v1113_v16 = vadd.f32 %v1112_v7, %v1111_v6 }
 0x138   : > { %2593 = vmatprep.subr.mxu1 %v594_v55  ;;  %v613_v57 = vpop.trf.xlu0  ;;  %v1695_v17 = vadd.f32 %v1694_v9, %v1693_v8 }
 0x13a   : > { %2378 = vmatmul.mubr.msk.f32.vlgmr.msra.gmra.mrb[0].mxu1 %vm430_vm3, %v3094_v26  ;;  %2379 = vmatmul.mubr.msk.f32.vlgmr.msra.gmra.mrb[4].mxu0 %vm430_vm3, %v3094_v26 }
 0x13b   : > { %2595 = vmatprep.mubr.msk.f32.mxu1 %vm203_vm0, %v611_v51  ;;  %2594 = vmatpush3.msra.mxu1 %v594_v55 }
 0x13c   : > { %v614_v26 = vpop.trf.xlu0 }
 0x13e   : > { %2596 = vmatmul.mubr.msk.f32.vlgmr.msra.gmra.mrb[2].mxu1 %vm203_vm0, %v612_v56 }
 0x13f   : > { %2598 = vmatprep.mubr.msk.f32.mxu1 %vm203_vm0, %v613_v57 }
 0x140   : > { %v615_v58 = vpop.trf.xlu0 }
 0x142   : > { %2599 = vmatmul.mubr.msk.f32.gmra.mrb[4].mxu1 %vm203_vm0, %v614_v26 }
 0x143   : > { %2601 = vmatprep.mubr.msk.f32.mxu1 %vm203_vm0, %v615_v58 }
 0x144   : > { %v616_v37 = vpop.trf.xlu0 }
 0x146   : > { %2602 = vmatmul.mubr.msk.f32.gmra.mrb[6].mxu1 %vm203_vm0, %v616_v37 }
 0x148   : > { %v617_v59 = vpop.trf.xlu0 }
 0x149   : > { %2604 = vmatprep.mubr.msk.f32.mxu1 %vm203_vm0, %v617_v59 }
 0x14c   : > { %v618_v60 = vpop.trf.xlu0 }
 0x14d   : > { %2605 = vmatmul.mubr.msk.f32.gmra.mrb[8].mxu1 %vm203_vm0, %v618_v60 }
 0x150   : > { %v619_v61 = vpop.trf.xlu0 }
 0x151   : > { %2607 = vmatprep.mubr.msk.f32.mxu1 %vm203_vm0, %v619_v61 }
 0x154   : > { %v620_v62 = vpop.trf.xlu0 }
 0x155   : > { %2608 = vmatmul.mubr.msk.f32.gmra.mrb[10].mxu1 %vm203_vm0, %v620_v62 }
 0x158   : > { %v621_v63 = vpop.trf.xlu0 }
 0x159   : > { %2610 = vmatprep.mubr.msk.f32.mxu1 %vm203_vm0, %v621_v63 }
 0x15c   : > { %v622_v1 = vpop.trf.xlu0 }
 0x15d   : > { %2611 = vmatmul.mubr.msk.f32.gmra.mrb[12].mxu1 %vm203_vm0, %v622_v1 }
 0x160   : > { %v623_v10 = vpop.trf.xlu0 }
 0x161   : > { %2613 = vmatprep.mubr.msk.f32.mxu1 %vm203_vm0, %v623_v10 }
 0x164   : > { %v624_v24 = vpop.trf.xlu0 }
 0x165   : > { %2614 = vmatmul.mubr.msk.f32.gmra.mrb[14].mxu1 %vm203_vm0, %v624_v24 }
 0x168   : > { %v625_v38 = vpop.trf.xlu0 }
 0x169   : > { %2616 = vmatprep.mubr.msk.f32.mxu1 %vm203_vm0, %v625_v38 }
 0x16c   : > { %v626_v47 = vpop.trf.xlu0 }
 0x16d   : > { %2617 = vmatmul.mubr.msk.f32.gmra.mrb[16].mxu1 %vm203_vm0, %v626_v47 }
 0x20d   : > { %v499_v14 = vpop.f32.mrb[0].mxu1  ;;  %v570_v15 = vpop.f32.mrb[4].mxu0 }
 0x20e   : > { %v500_v18 = vadd.f32 %v499_v14, %v428_v11  ;;  %v571_v19 = vadd.f32 %v570_v15, %v428_v11  ;;  %v501_v20 = vpop.f32.mrb[1].mxu1  ;;  %v572_v21 = vpop.f32.mrb[5].mxu0 }
 0x20f   : > { %v502_v22 = vadd.f32 %v501_v20, %v428_v11  ;;  %v573_v23 = vadd.f32 %v572_v21, %v428_v11 }
 0x210   : > { %v823_v25 = vadd.f32 %v822_v12, %v500_v18  ;;  %v1405_v28 = vadd.f32 %v1404_v13, %v571_v19 }
 0x211   : > { %v1114_v29 = vadd.f32 %v1113_v16, %v502_v22  ;;  %v1696_v30 = vadd.f32 %v1695_v17, %v573_v23 }
 0x212   : > { %v824_v31 = vmul.f32 %v823_v25, %v823_v25  ;;  %v1406_v32 = vmul.f32 %v1405_v28, %v1405_v28  ;;  %v831_v26 = vadd.f32 %v823_v25, %v3100_v34  ;;  %v836_v37 = vmul.f32 2.0, %v823_v25 }
 0x213   : > { %v1115_v33 = vmul.f32 %v1114_v29, %v1114_v29  ;;  %v1697_v35 = vmul.f32 %v1696_v30, %v1696_v30  ;;  %v1704_v60 = vadd.f32 %v1696_v30, %v3100_v34  ;;  %v1122_v62 = vadd.f32 %v1114_v29, %v3100_v34 }
 0x214   : > { %v825_v39 = vrot.slane %v824_v31, 4  ;;  %v1407_v40 = vrot.slane %v1406_v32, 4  ;;  %v1127_v2 = vmul.f32 2.0, %v1114_v29  ;;  %v1413_v4 = vadd.f32 %v1405_v28, %v3100_v34 }
 0x215   : > { %v1116_v41 = vrot.slane %v1115_v33, 4  ;;  %v1698_v42 = vrot.slane %v1697_v35, 4  ;;  %v1418_v22 = vmul.f32 2.0, %v1405_v28  ;;  %v1709_v24 = vmul.f32 2.0, %v1696_v30 }
 0x216   : > { %v826_v43 = vadd.f32 %v825_v39, %v824_v31  ;;  %v1408_v44 = vadd.f32 %v1407_v40, %v1406_v32  ;;  %v1984_v31 = vmul.f32 %v3128_v0, %v3128_v0  ;;  %v1991_v39 = vadd.f32 %v3100_v34, %v3128_v0 }
 0x217   : > { %v1117_v45 = vadd.f32 %v1116_v41, %v1115_v33  ;;  %v1699_v46 = vadd.f32 %v1698_v42, %v1697_v35 }
 0x218   : > { %v827_v49 = vrot.slane %v826_v43, 2  ;;  %v1409_v50 = vrot.slane %v1408_v44, 2  ;;  %v1985_v32 = vrot.slane %v1984_v31, 4 }
 0x219   : > { %v1118_v48 = vrot.slane %v1117_v45, 2  ;;  %v1700_v51 = vrot.slane %v1699_v46, 2 }
 0x21a   : > { %v1410_v52 = vadd.f32 %v1409_v50, %v1408_v44  ;;  %v828_v53 = vadd.f32 %v827_v49, %v826_v43  ;;  %v1986_v33 = vadd.f32 %v1985_v32, %v1984_v31  ;;  %v1996_v43 = vmul.f32 2.0, %v3128_v0 }
 0x21b   : > { %v1701_v54 = vadd.f32 %v1700_v51, %v1699_v46  ;;  %v1119_v55 = vadd.f32 %v1118_v48, %v1117_v45 }
 0x21c   : > { %v829_v56 = vrot.slane %v828_v53, 1  ;;  %v1411_v57 = vrot.slane %v1410_v52, 1  ;;  %v1987_v35 = vrot.slane %v1986_v33, 2 }
 0x21d   : > { %v1120_v58 = vrot.slane %v1119_v55, 1  ;;  %v1702_v59 = vrot.slane %v1701_v54, 1 }
 0x21e   : > { %v830_v61 = vadd.f32 %v829_v56, %v828_v53  ;;  %v1412_v63 = vadd.f32 %v1411_v57, %v1410_v52  ;;  %v1988_v28 = vadd.f32 %v1987_v35, %v1986_v33 }
 0x21f   : > { %v1121_v1 = vadd.f32 %v1120_v58, %v1119_v55  ;;  %v1703_v3 = vadd.f32 %v1702_v59, %v1701_v54 }
 0x220   : > { %v832_v5 = vmul.f32 %v830_v61, %v3102_v36  ;;  %v834_v6 = vmul.f32 %v830_v61, %v3100_v34  ;;  %v1416_v7 = vmul.f32 %v1412_v63, %v3100_v34  ;;  %v1414_v8 = vmul.f32 %v1412_v63, %v3102_v36 }
 0x221   : > { %v1123_v9 = vmul.f32 %v1121_v1, %v3102_v36  ;;  %v1125_v10 = vmul.f32 %v1121_v1, %v3100_v34  ;;  %v1707_v11 = vmul.f32 %v1703_v3, %v3100_v34  ;;  %v1705_v12 = vmul.f32 %v1703_v3, %v3102_v36 }
 0x222   : > { %v833_v13 = vadd.f32 %v832_v5, %v831_v26  ;;  %v835_v14 = vadd.f32 %v834_v6, %v3102_v36  ;;  %v1417_v15 = vadd.f32 %v1416_v7, %v3102_v36  ;;  %v1415_v16 = vadd.f32 %v1414_v8, %v1413_v4 }
 0x223   : > { %v1124_v17 = vadd.f32 %v1123_v9, %v1122_v62  ;;  %v1126_v18 = vadd.f32 %v1125_v10, %v3102_v36  ;;  %v1708_v19 = vadd.f32 %v1707_v11, %v3102_v36  ;;  %v1706_v20 = vadd.f32 %v1705_v12, %v1704_v60  ;;  %v3202_v9 = vpop.f32.mrb[2].mxu1 }
 0x224   : > { %838 = vxpose.xlu1.b32.start.end [1/1] (short) %v833_v13, 128  ;;  %v837_v21 = vsub.f32 %v835_v14, %v836_v37  ;;  %v1419_v25 = vsub.f32 %v1417_v15, %v1418_v22  ;;  %v1989_v30 = vrot.slane %v1988_v28, 1  ;;  %v3205_v10 = vpop.f32.mrb[3].mxu1 }
 0x225   : > { %1129 = vxpose.xlu0.b32.start.end [1/1] (short) %v1124_v17, 128  ;;  %v1128_v23 = vsub.f32 %v1126_v18, %v1127_v2  ;;  %v1710_v29 = vsub.f32 %v1708_v19, %v1709_v24  ;;  %v3207_v11 = vpop.f32.mrb[4].mxu1 }
 0x226   : > { %2619 = vmatprep.subr.mxu0 %v837_v21  ;;  %v1990_v38 = vadd.f32 %v1989_v30, %v1988_v28  ;;  %v3209_v13 = vpop.f32.mrb[5].mxu1 }
 0x227   : > { %2620 = vmatpush3.msra.mxu0 %v837_v21  ;;  %2645 = vmatprep.subr.mxu1 %v1128_v23  ;;  %v3212_v15 = vpop.f32.mrb[6].mxu1 }
 0x228   : > { %2646 = vmatpush3.msra.mxu1 %v1128_v23  ;;  %2671 = vmatprep.subr.mxu0 %v1419_v25  ;;  %v1992_v40 = vmul.f32 %v1990_v38, %v3102_v36  ;;  %v1994_v42 = vmul.f32 %v1990_v38, %v3100_v34 }
 0x229   : > { %2697 = vmatprep.subr.mxu1 %v1710_v29 }
 0x22a   : > { %v1993_v41 = vadd.f32 %v1992_v40, %v1991_v39  ;;  %v1995_v45 = vadd.f32 %v1994_v42, %v3102_v36 }
 0x261   : > { %1420 = vxpose.xlu1.b32.start.end [1/1] (short) %v1415_v16, 128  ;;  %v3215_v16 = vpop.f32.mrb[7].mxu1 }
 0x262   : > { %1711 = vxpose.xlu0.b32.start.end [1/1] (short) %v1706_v20, 128  ;;  %v3217_v17 = vpop.f32.mrb[8].mxu1 }
 0x263   : > { %v3219_v19 = vpop.f32.mrb[9].mxu1 }
 0x264   : > { %v3222_v21 = vpop.f32.mrb[10].mxu1 }
 0x265   : > { %v3226_v22 = vpop.f32.mrb[11].mxu1 }
 0x266   : > { %v3228_v23 = vpop.f32.mrb[12].mxu1 }
 0x28b   : > { %2832 = vset.pattern.permute.xlu0 %v2938_v27  ;;  %v3170_v27 = vsub.f32 %v1995_v45, %v1996_v43 }
 0x29e   : > { %1998 = vxpose.xlu1.b32.start.end [1/1] (short) %v1993_v41, 128 }
 0x2a4   : > { %v854_v44 = vpop.trf.xlu1 }
 0x2a5   : > { %2621 = vmatprep.mubr.msk.f32.mxu0 %vm203_vm0, %v854_v44  ;;  %v1145_v46 = vpop.trf.xlu0 }
 0x2a6   : > { %2647 = vmatprep.mubr.msk.f32.mxu1 %vm203_vm0, %v1145_v46 }
 0x2a8   : > { %v855_v47 = vpop.trf.xlu1 }
 0x2a9   : > { %2622 = vmatmul.mubr.msk.f32.vlgmr.msra.gmra.mrb[6].mxu0 %vm203_vm0, %v855_v47  ;;  %v1146_v49 = vpop.trf.xlu0 }
 0x2aa   : > { %2672 = vmatpush3.msra.mxu0 %v1419_v25  ;;  %2648 = vmatmul.mubr.msk.f32.vlgmr.msra.gmra.mrb[18].mxu1 %vm203_vm0, %v1146_v49  ;;  %v3230_v25 = vpop.f32.mrb[13].mxu1 }
 0x2ab   : > { %2698 = vmatpush3.msra.mxu1 %v1710_v29  ;;  %2723 = vmatprep.subr.mxu0 %v3170_v27  ;;  %v3233_v31 = vpop.f32.mrb[14].mxu1 }
 0x2ac   : > { %v856_v34 = vpop.trf.xlu1  ;;  %v3236_v32 = vpop.f32.mrb[15].mxu1 }
 0x2ad   : > { %2624 = vmatprep.mubr.msk.f32.mxu0 %vm203_vm0, %v856_v34  ;;  %v1147_v36 = vpop.trf.xlu0  ;;  %v3238_v33 = vpop.f32.mrb[16].mxu1 }
 0x2ae   : > { %2650 = vmatprep.mubr.msk.f32.mxu1 %vm203_vm0, %v1147_v36  ;;  %v3240_v28 = vpop.f32.mrb[17].mxu1 }
 0x2b0   : > { %v857_v0 = vpop.trf.xlu1 }
 0x2b1   : > { %2625 = vmatmul.mubr.msk.f32.gmra.mrb[8].mxu0 %vm203_vm0, %v857_v0  ;;  %v1148_v50 = vpop.trf.xlu0 }
 0x2b2   : > { %2651 = vmatmul.mubr.msk.f32.gmra.mrb[20].mxu1 %vm203_vm0, %v1148_v50 }
 0x2b4   : > { %v858_v48 = vpop.trf.xlu1 }
 0x2b5   : > { %2627 = vmatprep.mubr.msk.f32.mxu0 %vm203_vm0, %v858_v48  ;;  %v1149_v51 = vpop.trf.xlu0 }
 0x2b6   : > { %2653 = vmatprep.mubr.msk.f32.mxu1 %vm203_vm0, %v1149_v51 }
 0x2b8   : > { %v859_v52 = vpop.trf.xlu1 }
 0x2b9   : > { %2628 = vmatmul.mubr.msk.f32.gmra.mrb[10].mxu0 %vm203_vm0, %v859_v52  ;;  %v1150_v53 = vpop.trf.xlu0 }
 0x2ba   : > { %2654 = vmatmul.mubr.msk.f32.gmra.mrb[22].mxu1 %vm203_vm0, %v1150_v53 }
 0x2bc   : > { %v860_v54 = vpop.trf.xlu1 }
 0x2bd   : > { %2630 = vmatprep.mubr.msk.f32.mxu0 %vm203_vm0, %v860_v54  ;;  %v1151_v55 = vpop.trf.xlu0 }
 0x2be   : > { %2656 = vmatprep.mubr.msk.f32.mxu1 %vm203_vm0, %v1151_v55 }
 0x2c0   : > { %v861_v56 = vpop.trf.xlu1 }
 0x2c1   : > { %2631 = vmatmul.mubr.msk.f32.gmra.mrb[12].mxu0 %vm203_vm0, %v861_v56  ;;  %v1152_v57 = vpop.trf.xlu0 }
 0x2c2   : > { %2657 = vmatmul.mubr.msk.f32.gmra.mrb[24].mxu1 %vm203_vm0, %v1152_v57 }
 0x2c4   : > { %v862_v26 = vpop.trf.xlu1 }
 0x2c5   : > { %2633 = vmatprep.mubr.msk.f32.mxu0 %vm203_vm0, %v862_v26  ;;  %v1153_v58 = vpop.trf.xlu0 }
 0x2c6   : > { %2659 = vmatprep.mubr.msk.f32.mxu1 %vm203_vm0, %v1153_v58 }
 0x2c8   : > { %v863_v37 = vpop.trf.xlu1 }
 0x2c9   : > { %2634 = vmatmul.mubr.msk.f32.gmra.mrb[14].mxu0 %vm203_vm0, %v863_v37  ;;  %v1154_v59 = vpop.trf.xlu0 }
 0x2ca   : > { %2660 = vmatmul.mubr.msk.f32.gmra.mrb[26].mxu1 %vm203_vm0, %v1154_v59 }
 0x2cc   : > { %v864_v60 = vpop.trf.xlu1 }
 0x2cd   : > { %2636 = vmatprep.mubr.msk.f32.mxu0 %vm203_vm0, %v864_v60  ;;  %v1155_v61 = vpop.trf.xlu0 }
 0x2ce   : > { %2662 = vmatprep.mubr.msk.f32.mxu1 %vm203_vm0, %v1155_v61 }
 0x2d0   : > { %v865_v62 = vpop.trf.xlu1 }
 0x2d1   : > { %2637 = vmatmul.mubr.msk.f32.gmra.mrb[16].mxu0 %vm203_vm0, %v865_v62  ;;  %v1156_v63 = vpop.trf.xlu0 }
 0x2d2   : > { %2663 = vmatmul.mubr.msk.f32.gmra.mrb[28].mxu1 %vm203_vm0, %v1156_v63 }
 0x2d4   : > { %v866_v1 = vpop.trf.xlu1 }
 0x2d5   : > { %2639 = vmatprep.mubr.msk.f32.mxu0 %vm203_vm0, %v866_v1  ;;  %v1157_v2 = vpop.trf.xlu0 }
 0x2d6   : > { %2665 = vmatprep.mubr.msk.f32.mxu1 %vm203_vm0, %v1157_v2 }
 0x2d8   : > { %v867_v3 = vpop.trf.xlu1 }
 0x2d9   : > { %2640 = vmatmul.mubr.msk.f32.gmra.mrb[18].mxu0 %vm203_vm0, %v867_v3  ;;  %v1158_v4 = vpop.trf.xlu0 }
 0x2da   : > { %2666 = vmatmul.mubr.msk.f32.gmra.mrb[30].mxu1 %vm203_vm0, %v1158_v4 }
 0x2dc   : > { %v868_v5 = vpop.trf.xlu1 }
 0x2dd   : > { %2642 = vmatprep.mubr.msk.f32.mxu0 %vm203_vm0, %v868_v5  ;;  %v1159_v6 = vpop.trf.xlu0 }
 0x2de   : > { %2668 = vmatprep.mubr.msk.f32.mxu1 %vm203_vm0, %v1159_v6 }
 0x2e0   : > { %v869_v7 = vpop.trf.xlu1 }
 0x2e1   : > { %2643 = vmatmul.mubr.msk.f32.gmra.mrb[20].mxu0 %vm203_vm0, %v869_v7  ;;  %v1160_v8 = vpop.trf.xlu0 }
 0x2e2   : > { %2669 = vmatmul.mubr.msk.f32.gmra.mrb[32].mxu1 %vm203_vm0, %v1160_v8 }
 0x2e4   : > { %v1436_v12 = vpop.trf.xlu1 }
 0x2e5   : > { %2673 = vmatprep.mubr.msk.f32.mxu0 %vm203_vm0, %v1436_v12  ;;  %v1727_v14 = vpop.trf.xlu0 }
 0x2e6   : > { %2699 = vmatprep.mubr.msk.f32.mxu1 %vm203_vm0, %v1727_v14 }
 0x2e8   : > { %v1437_v18 = vpop.trf.xlu1 }
 0x2e9   : > { %2674 = vmatmul.mubr.msk.f32.vlgmr.msra.gmra.mrb[22].mxu0 %vm203_vm0, %v1437_v18  ;;  %v1728_v20 = vpop.trf.xlu0 }
 0x2ea   : > { %2700 = vmatmul.mubr.msk.f32.vlgmr.msra.gmra.mrb[34].mxu1 %vm203_vm0, %v1728_v20  ;;  %2724 = vmatpush3.msra.mxu0 %v3170_v27 }
 0x2ec   : > { %v1438_v24 = vpop.trf.xlu1 }
 0x2ed   : > { %2676 = vmatprep.mubr.msk.f32.mxu0 %vm203_vm0, %v1438_v24  ;;  %v1729_v29 = vpop.trf.xlu0 }
 0x2ee   : > { %2702 = vmatprep.mubr.msk.f32.mxu1 %vm203_vm0, %v1729_v29 }
 0x2f0   : > { %v1439_v35 = vpop.trf.xlu1 }
 0x2f1   : > { %2677 = vmatmul.mubr.msk.f32.gmra.mrb[24].mxu0 %vm203_vm0, %v1439_v35  ;;  %v1730_v30 = vpop.trf.xlu0 }
 0x2f2   : > { %2703 = vmatmul.mubr.msk.f32.gmra.mrb[36].mxu1 %vm203_vm0, %v1730_v30 }
 0x2f4   : > { %v1440_v38 = vpop.trf.xlu1 }
 0x2f5   : > { %2679 = vmatprep.mubr.msk.f32.mxu0 %vm203_vm0, %v1440_v38  ;;  %v1731_v39 = vpop.trf.xlu0 }
 0x2f6   : > { %2705 = vmatprep.mubr.msk.f32.mxu1 %vm203_vm0, %v1731_v39 }
 0x2f8   : > { %v1441_v40 = vpop.trf.xlu1 }
 0x2f9   : > { %2680 = vmatmul.mubr.msk.f32.gmra.mrb[26].mxu0 %vm203_vm0, %v1441_v40  ;;  %v1732_v41 = vpop.trf.xlu0 }
 0x2fa   : > { %2706 = vmatmul.mubr.msk.f32.gmra.mrb[38].mxu1 %vm203_vm0, %v1732_v41 }
 0x2fc   : > { %v1442_v42 = vpop.trf.xlu1 }
 0x2fd   : > { %2682 = vmatprep.mubr.msk.f32.mxu0 %vm203_vm0, %v1442_v42  ;;  %v1733_v43 = vpop.trf.xlu0 }
 0x2fe   : > { %2708 = vmatprep.mubr.msk.f32.mxu1 %vm203_vm0, %v1733_v43 }
 0x300   : > { %v1443_v44 = vpop.trf.xlu1 }
 0x301   : > { %2683 = vmatmul.mubr.msk.f32.gmra.mrb[28].mxu0 %vm203_vm0, %v1443_v44  ;;  %v1734_v45 = vpop.trf.xlu0 }
 0x302   : > { %2709 = vmatmul.mubr.msk.f32.gmra.mrb[40].mxu1 %vm203_vm0, %v1734_v45 }
 0x304   : > { %v1444_v46 = vpop.trf.xlu1 }
 0x305   : > { %2685 = vmatprep.mubr.msk.f32.mxu0 %vm203_vm0, %v1444_v46  ;;  %v1735_v27 = vpop.trf.xlu0 }
 0x306   : > { %2711 = vmatprep.mubr.msk.f32.mxu1 %vm203_vm0, %v1735_v27 }
 0x308   : > { %v1445_v47 = vpop.trf.xlu1 }
 0x309   : > { %2686 = vmatmul.mubr.msk.f32.gmra.mrb[30].mxu0 %vm203_vm0, %v1445_v47  ;;  %v1736_v49 = vpop.trf.xlu0 }
 0x30a   : > { %2712 = vmatmul.mubr.msk.f32.gmra.mrb[42].mxu1 %vm203_vm0, %v1736_v49 }
 0x30c   : > { %v1446_v34 = vpop.trf.xlu1 }
 0x30d   : > { %2688 = vmatprep.mubr.msk.f32.mxu0 %vm203_vm0, %v1446_v34  ;;  %v1737_v36 = vpop.trf.xlu0 }
 0x30e   : > { %2714 = vmatprep.mubr.msk.f32.mxu1 %vm203_vm0, %v1737_v36 }
 0x310   : > { %v1447_v0 = vpop.trf.xlu1 }
 0x311   : > { %2689 = vmatmul.mubr.msk.f32.gmra.mrb[32].mxu0 %vm203_vm0, %v1447_v0  ;;  %v1738_v50 = vpop.trf.xlu0 }
 0x312   : > { %2715 = vmatmul.mubr.msk.f32.gmra.mrb[44].mxu1 %vm203_vm0, %v1738_v50 }
 0x314   : > { %v1448_v48 = vpop.trf.xlu1 }
 0x315   : > { %2691 = vmatprep.mubr.msk.f32.mxu0 %vm203_vm0, %v1448_v48  ;;  %v1739_v51 = vpop.trf.xlu0 }
 0x316   : > { %2717 = vmatprep.mubr.msk.f32.mxu1 %vm203_vm0, %v1739_v51 }
 0x318   : > { %v1449_v52 = vpop.trf.xlu1 }
 0x319   : > { %2692 = vmatmul.mubr.msk.f32.gmra.mrb[34].mxu0 %vm203_vm0, %v1449_v52  ;;  %v1740_v53 = vpop.trf.xlu0 }
 0x31a   : > { %2718 = vmatmul.mubr.msk.f32.gmra.mrb[46].mxu1 %vm203_vm0, %v1740_v53 }
 0x31c   : > { %v1450_v54 = vpop.trf.xlu1 }
 0x31d   : > { %2694 = vmatprep.mubr.msk.f32.mxu0 %vm203_vm0, %v1450_v54  ;;  %v1741_v55 = vpop.trf.xlu0 }
 0x31e   : > { %2720 = vmatprep.mubr.msk.f32.mxu1 %vm203_vm0, %v1741_v55 }
 0x320   : > { %v1451_v56 = vpop.trf.xlu1 }
 0x321   : > { %2695 = vmatmul.mubr.msk.f32.gmra.mrb[36].mxu0 %vm203_vm0, %v1451_v56  ;;  %v1742_v57 = vpop.trf.xlu0 }
 0x322   : > { %2721 = vmatmul.mubr.msk.f32.gmra.mrb[48].mxu1 %vm203_vm0, %v1742_v57 }
 0x324   : > { %v2014_v26 = vpop.trf.xlu1 }
 0x325   : > { %2725 = vmatprep.mubr.msk.f32.mxu0 %vm203_vm0, %v2014_v26 }
 0x328   : > { %v2015_v58 = vpop.trf.xlu1 }
 0x329   : > { %2726 = vmatmul.mubr.msk.f32.vlgmr.msra.gmra.mrb[38].mxu0 %vm203_vm0, %v2015_v58 }
 0x32c   : > { %v2016_v37 = vpop.trf.xlu1 }
 0x32d   : > { %2728 = vmatprep.mubr.msk.f32.mxu0 %vm203_vm0, %v2016_v37 }
 0x330   : > { %v2017_v59 = vpop.trf.xlu1 }
 0x331   : > { %2729 = vmatmul.mubr.msk.f32.gmra.mrb[40].mxu0 %vm203_vm0, %v2017_v59 }
 0x334   : > { %v2018_v60 = vpop.trf.xlu1 }
 0x335   : > { %2731 = vmatprep.mubr.msk.f32.mxu0 %vm203_vm0, %v2018_v60 }
 0x338   : > { %v2019_v61 = vpop.trf.xlu1 }
 0x339   : > { %2732 = vmatmul.mubr.msk.f32.gmra.mrb[42].mxu0 %vm203_vm0, %v2019_v61 }
 0x33c   : > { %v2020_v62 = vpop.trf.xlu1 }
 0x33d   : > { %2734 = vmatprep.mubr.msk.f32.mxu0 %vm203_vm0, %v2020_v62 }
 0x340   : > { %v2021_v63 = vpop.trf.xlu1 }
 0x341   : > { %2735 = vmatmul.mubr.msk.f32.gmra.mrb[44].mxu0 %vm203_vm0, %v2021_v63 }
 0x344   : > { %v2022_v1 = vpop.trf.xlu1 }
 0x345   : > { %2737 = vmatprep.mubr.msk.f32.mxu0 %vm203_vm0, %v2022_v1 }
 0x348   : > { %v2023_v2 = vpop.trf.xlu1 }
 0x349   : > { %2738 = vmatmul.mubr.msk.f32.gmra.mrb[46].mxu0 %vm203_vm0, %v2023_v2 }
 0x34c   : > { %v2024_v3 = vpop.trf.xlu1 }
 0x34d   : > { %2740 = vmatprep.mubr.msk.f32.mxu0 %vm203_vm0, %v2024_v3 }
 0x350   : > { %v2025_v4 = vpop.trf.xlu1 }
 0x351   : > { %2741 = vmatmul.mubr.msk.f32.gmra.mrb[48].mxu0 %vm203_vm0, %v2025_v4 }
 0x354   : > { %v2026_v5 = vpop.trf.xlu1 }
 0x355   : > { %2743 = vmatprep.mubr.msk.f32.mxu0 %vm203_vm0, %v2026_v5 }
 0x358   : > { %v2027_v6 = vpop.trf.xlu1 }
 0x359   : > { %2744 = vmatmul.mubr.msk.f32.gmra.mrb[50].mxu0 %vm203_vm0, %v2027_v6 }
 0x35c   : > { %v2028_v7 = vpop.trf.xlu1 }
 0x35d   : > { %2746 = vmatprep.mubr.msk.f32.mxu0 %vm203_vm0, %v2028_v7 }
 0x360   : > { %v2029_v8 = vpop.trf.xlu1 }
 0x361   : > { %2747 = vmatmul.mubr.msk.f32.gmra.mrb[52].mxu0 %vm203_vm0, %v2029_v8 }
 0x37c   : > { %v2623_v12 = vpop.f32.mrb[6].mxu0 }
 0x37d   : > { %v1064_v14 = vsub.f32 %v3202_v9, %v2623_v12  ;;  %v984_v18 = vpop.f32.mrb[7].mxu0  ;;  %v3285_v20 = vpop.f32.mrb[18].mxu1 }
 0x37e   : > { %v1063_v24 = vsub.f32 %v3205_v10, %v984_v18  ;;  %v1355_v29 = vsub.f32 %v2623_v12, %v3285_v20  ;;  %v3289_v35 = vpop.f32.mrb[19].mxu1 }
 0x37f   : > { %v1080_v30 = vmul.f32 %v1064_v14, %v1064_v14  ;;  %v1354_v38 = vsub.f32 %v984_v18, %v3289_v35 }
 0x380   : > { %v1079_v39 = vmul.f32 %v1063_v24, %v1063_v24  ;;  %v1371_v40 = vmul.f32 %v1355_v29, %v1355_v29 }
 0x381   : > { %v1370_v41 = vmul.f32 %v1354_v38, %v1354_v38 }
 0x382   : > { %v3292_v42 = vadd.f32 %v1371_v40, %v1080_v30 }
 0x383   : > { %v3294_v43 = vadd.f32 %v1370_v41, %v1079_v39 }
 0x384   : > { %v2626_v9 = vpop.f32.mrb[8].mxu0 }
 0x385   : > { %v1066_v44 = vsub.f32 %v3207_v11, %v2626_v9  ;;  %v994_v45 = vpop.f32.mrb[9].mxu0  ;;  %v3297_v46 = vpop.f32.mrb[20].mxu1 }
 0x386   : > { %v1065_v10 = vsub.f32 %v3209_v13, %v994_v45  ;;  %v1357_v27 = vsub.f32 %v2626_v9, %v3297_v46  ;;  %v3301_v47 = vpop.f32.mrb[21].mxu1 }
 0x387   : > { %v1082_v49 = vmul.f32 %v1066_v44, %v1066_v44  ;;  %v1356_v34 = vsub.f32 %v994_v45, %v3301_v47 }
 0x388   : > { %v1081_v36 = vmul.f32 %v1065_v10, %v1065_v10  ;;  %v1373_v0 = vmul.f32 %v1357_v27, %v1357_v27 }
 0x389   : > { %v1372_v50 = vmul.f32 %v1356_v34, %v1356_v34 }
 0x38a   : > { %v3304_v48 = vadd.f32 %v1373_v0, %v1082_v49 }
 0x38b   : > { %v3306_v51 = vadd.f32 %v1372_v50, %v1081_v36 }
 0x38c   : > { %v2629_v11 = vpop.f32.mrb[10].mxu0 }
 0x38d   : > { %v1068_v52 = vsub.f32 %v3212_v15, %v2629_v11  ;;  %v1004_v53 = vpop.f32.mrb[11].mxu0  ;;  %v3309_v54 = vpop.f32.mrb[22].mxu1 }
 0x38e   : > { %v1067_v13 = vsub.f32 %v3215_v16, %v1004_v53  ;;  %v1359_v55 = vsub.f32 %v2629_v11, %v3309_v54  ;;  %v3313_v56 = vpop.f32.mrb[23].mxu1 }
 0x38f   : > { %v1084_v57 = vmul.f32 %v1068_v52, %v1068_v52  ;;  %v1358_v26 = vsub.f32 %v1004_v53, %v3313_v56 }
 0x390   : > { %v1083_v58 = vmul.f32 %v1067_v13, %v1067_v13  ;;  %v1375_v37 = vmul.f32 %v1359_v55, %v1359_v55 }
 0x391   : > { %v1374_v59 = vmul.f32 %v1358_v26, %v1358_v26 }
 0x392   : > { %v3316_v60 = vadd.f32 %v1375_v37, %v1084_v57 }
 0x393   : > { %v3318_v61 = vadd.f32 %v1374_v59, %v1083_v58 }
 0x394   : > { %v2632_v15 = vpop.f32.mrb[12].mxu0 }
 0x395   : > { %v1070_v62 = vsub.f32 %v3217_v17, %v2632_v15  ;;  %v1014_v63 = vpop.f32.mrb[13].mxu0  ;;  %v3321_v1 = vpop.f32.mrb[24].mxu1 }
 0x396   : > { %v1069_v16 = vsub.f32 %v3219_v19, %v1014_v63  ;;  %v1361_v2 = vsub.f32 %v2632_v15, %v3321_v1  ;;  %v3325_v3 = vpop.f32.mrb[25].mxu1 }
 0x397   : > { %v1086_v4 = vmul.f32 %v1070_v62, %v1070_v62  ;;  %v1360_v5 = vsub.f32 %v1014_v63, %v3325_v3 }
 0x398   : > { %v1085_v6 = vmul.f32 %v1069_v16, %v1069_v16  ;;  %v1377_v7 = vmul.f32 %v1361_v2, %v1361_v2 }
 0x399   : > { %v1376_v8 = vmul.f32 %v1360_v5, %v1360_v5 }
 0x39a   : > { %v3328_v12 = vadd.f32 %v1377_v7, %v1086_v4 }
 0x39b   : > { %v3330_v14 = vadd.f32 %v1376_v8, %v1085_v6 }
 0x39c   : > { %v2635_v17 = vpop.f32.mrb[14].mxu0 }
 0x39d   : > { %v1072_v18 = vsub.f32 %v3222_v21, %v2635_v17  ;;  %v1024_v24 = vpop.f32.mrb[15].mxu0  ;;  %v3333_v29 = vpop.f32.mrb[26].mxu1 }
 0x39e   : > { %v1071_v19 = vsub.f32 %v3226_v22, %v1024_v24  ;;  %v1363_v30 = vsub.f32 %v2635_v17, %v3333_v29  ;;  %v3337_v38 = vpop.f32.mrb[27].mxu1 }
 0x39f   : > { %v1088_v39 = vmul.f32 %v1072_v18, %v1072_v18  ;;  %v1362_v40 = vsub.f32 %v1024_v24, %v3337_v38 }
 0x3a0   : > { %v1087_v41 = vmul.f32 %v1071_v19, %v1071_v19  ;;  %v1379_v9 = vmul.f32 %v1363_v30, %v1363_v30 }
 0x3a1   : > { %v1378_v44 = vmul.f32 %v1362_v40, %v1362_v40 }
 0x3a2   : > { %v3340_v45 = vadd.f32 %v1379_v9, %v1088_v39 }
 0x3a3   : > { %v3342_v10 = vadd.f32 %v1378_v44, %v1087_v41 }
 0x3a4   : > { %v2638_v21 = vpop.f32.mrb[16].mxu0 }
 0x3a5   : > { %v1074_v27 = vsub.f32 %v3228_v23, %v2638_v21  ;;  %v1034_v49 = vpop.f32.mrb[17].mxu0  ;;  %v3345_v34 = vpop.f32.mrb[28].mxu1 }
 0x3a6   : > { %v1073_v22 = vsub.f32 %v3230_v25, %v1034_v49  ;;  %v1365_v36 = vsub.f32 %v2638_v21, %v3345_v34  ;;  %v3349_v0 = vpop.f32.mrb[29].mxu1 }
 0x3a7   : > { %v1090_v50 = vmul.f32 %v1074_v27, %v1074_v27  ;;  %v1364_v11 = vsub.f32 %v1034_v49, %v3349_v0 }
 0x3a8   : > { %v1089_v52 = vmul.f32 %v1073_v22, %v1073_v22  ;;  %v1381_v53 = vmul.f32 %v1365_v36, %v1365_v36 }
 0x3a9   : > { %v1380_v13 = vmul.f32 %v1364_v11, %v1364_v11 }
 0x3aa   : > { %v3352_v55 = vadd.f32 %v1381_v53, %v1090_v50 }
 0x3ab   : > { %v3354_v57 = vadd.f32 %v1380_v13, %v1089_v52 }
 0x3ac   : > { %v2641_v23 = vpop.f32.mrb[18].mxu0 }
 0x3ad   : > { %v1076_v26 = vsub.f32 %v3233_v31, %v2641_v23  ;;  %v1044_v58 = vpop.f32.mrb[19].mxu0  ;;  %v3357_v37 = vpop.f32.mrb[30].mxu1 }
 0x3ae   : > { %v1075_v25 = vsub.f32 %v3236_v32, %v1044_v58  ;;  %v1367_v59 = vsub.f32 %v2641_v23, %v3357_v37  ;;  %v3361_v15 = vpop.f32.mrb[31].mxu1 }
 0x3af   : > { %v1092_v62 = vmul.f32 %v1076_v26, %v1076_v26  ;;  %v1366_v63 = vsub.f32 %v1044_v58, %v3361_v15 }
 0x3b0   : > { %v1091_v16 = vmul.f32 %v1075_v25, %v1075_v25  ;;  %v1383_v2 = vmul.f32 %v1367_v59, %v1367_v59 }
 0x3b1   : > { %v1382_v4 = vmul.f32 %v1366_v63, %v1366_v63 }
 0x3b2   : > { %v3364_v5 = vadd.f32 %v1383_v2, %v1092_v62 }
 0x3b3   : > { %v3366_v6 = vadd.f32 %v1382_v4, %v1091_v16 }
 0x3b4   : > { %v2644_v31 = vpop.f32.mrb[20].mxu0 }
 0x3b5   : > { %v1078_v7 = vsub.f32 %v3238_v33, %v2644_v31  ;;  %v1054_v8 = vpop.f32.mrb[21].mxu0  ;;  %v3369_v17 = vpop.f32.mrb[32].mxu1 }
 0x3b6   : > { %v1077_v32 = vsub.f32 %v3240_v28, %v1054_v8  ;;  %v1369_v18 = vsub.f32 %v2644_v31, %v3369_v17  ;;  %v3373_v24 = vpop.f32.mrb[33].mxu1 }
 0x3b7   : > { %v1094_v19 = vmul.f32 %v1078_v7, %v1078_v7  ;;  %v1368_v30 = vsub.f32 %v1054_v8, %v3373_v24 }
 0x3b8   : > { %v1093_v39 = vmul.f32 %v1077_v32, %v1077_v32  ;;  %v1385_v40 = vmul.f32 %v1369_v18, %v1369_v18 }
 0x3b9   : > { %v1384_v41 = vmul.f32 %v1368_v30, %v1368_v30 }
 0x3ba   : > { %v3376_v9 = vadd.f32 %v1385_v40, %v1094_v19 }
 0x3bb   : > { %v3378_v44 = vadd.f32 %v1384_v41, %v1093_v39 }
 0x3bc   : > { %v2675_v33 = vpop.f32.mrb[22].mxu0 }
 0x3bd   : > { %v1646_v21 = vsub.f32 %v3285_v20, %v2675_v33  ;;  %v1566_v27 = vpop.f32.mrb[23].mxu0  ;;  %v3381_v49 = vpop.f32.mrb[34].mxu1 }
 0x3be   : > { %v1645_v28 = vsub.f32 %v3289_v35, %v1566_v27  ;;  %v1937_v22 = vsub.f32 %v2675_v33, %v3381_v49  ;;  %v3385_v36 = vpop.f32.mrb[35].mxu1 }
 0x3bf   : > { %v1662_v50 = vmul.f32 %v1646_v21, %v1646_v21  ;;  %v1936_v11 = vsub.f32 %v1566_v27, %v3385_v36 }
 0x3c0   : > { %v1661_v52 = vmul.f32 %v1645_v28, %v1645_v28  ;;  %v1953_v53 = vmul.f32 %v1937_v22, %v1937_v22 }
 0x3c1   : > { %v1678_v13 = vadd.f32 %v1662_v50, %v3292_v42  ;;  %v1952_v23 = vmul.f32 %v1936_v11, %v1936_v11 }
 0x3c2   : > { %v1677_v26 = vadd.f32 %v1661_v52, %v3294_v43 }
 0x3c3   : > { %v3390_v20 = vadd.f32 %v1953_v53, %v1678_v13 }
 0x3c4   : > { %v3392_v58 = vadd.f32 %v1952_v23, %v1677_v26  ;;  %v2678_v25 = vpop.f32.mrb[24].mxu0 }
 0x3c5   : > { %v1648_v35 = vsub.f32 %v3297_v46, %v2678_v25  ;;  %v1576_v59 = vpop.f32.mrb[25].mxu0  ;;  %v3395_v62 = vpop.f32.mrb[36].mxu1 }
 0x3c6   : > { %v1647_v63 = vsub.f32 %v3301_v47, %v1576_v59  ;;  %v1939_v16 = vsub.f32 %v2678_v25, %v3395_v62  ;;  %v3399_v2 = vpop.f32.mrb[37].mxu1 }
 0x3c7   : > { %v1664_v42 = vmul.f32 %v1648_v35, %v1648_v35  ;;  %v1938_v4 = vsub.f32 %v1576_v59, %v3399_v2 }
 0x3c8   : > { %v1663_v43 = vmul.f32 %v1647_v63, %v1647_v63  ;;  %v1955_v31 = vmul.f32 %v1939_v16, %v1939_v16 }
 0x3c9   : > { %v1680_v7 = vadd.f32 %v1664_v42, %v3304_v48  ;;  %v1954_v8 = vmul.f32 %v1938_v4, %v1938_v4 }
 0x3ca   : > { %v1679_v32 = vadd.f32 %v1663_v43, %v3306_v51 }
 0x3cb   : > { %v3404_v46 = vadd.f32 %v1955_v31, %v1680_v7 }
 0x3cc   : > { %v3406_v18 = vadd.f32 %v1954_v8, %v1679_v32  ;;  %v2681_v19 = vpop.f32.mrb[26].mxu0 }
 0x3cd   : > { %v1650_v47 = vsub.f32 %v3309_v54, %v2681_v19  ;;  %v1586_v30 = vpop.f32.mrb[27].mxu0  ;;  %v3409_v39 = vpop.f32.mrb[38].mxu1 }
 0x3ce   : > { %v1649_v40 = vsub.f32 %v3313_v56, %v1586_v30  ;;  %v1941_v41 = vsub.f32 %v2681_v19, %v3409_v39  ;;  %v3413_v33 = vpop.f32.mrb[39].mxu1 }
 0x3cf   : > { %v1666_v48 = vmul.f32 %v1650_v47, %v1650_v47  ;;  %v1940_v21 = vsub.f32 %v1586_v30, %v3413_v33 }
 0x3d0   : > { %v1665_v51 = vmul.f32 %v1649_v40, %v1649_v40  ;;  %v1957_v27 = vmul.f32 %v1941_v41, %v1941_v41 }
 0x3d1   : > { %v1682_v28 = vadd.f32 %v1666_v48, %v3316_v60  ;;  %v1956_v22 = vmul.f32 %v1940_v21, %v1940_v21 }
 0x3d2   : > { %v1681_v50 = vadd.f32 %v1665_v51, %v3318_v61 }
 0x3d3   : > { %v3418_v54 = vadd.f32 %v1957_v27, %v1682_v28 }
 0x3d4   : > { %v3420_v11 = vadd.f32 %v1956_v22, %v1681_v50  ;;  %v2684_v52 = vpop.f32.mrb[28].mxu0 }
 0x3d5   : > { %v1652_v56 = vsub.f32 %v3321_v1, %v2684_v52  ;;  %v1596_v53 = vpop.f32.mrb[29].mxu0  ;;  %v3423_v13 = vpop.f32.mrb[40].mxu1 }
 0x3d6   : > { %v1651_v23 = vsub.f32 %v3325_v3, %v1596_v53  ;;  %v1943_v26 = vsub.f32 %v2684_v52, %v3423_v13  ;;  %v3427_v25 = vpop.f32.mrb[41].mxu1 }
 0x3d7   : > { %v1668_v60 = vmul.f32 %v1652_v56, %v1652_v56  ;;  %v1942_v35 = vsub.f32 %v1596_v53, %v3427_v25 }
 0x3d8   : > { %v1667_v61 = vmul.f32 %v1651_v23, %v1651_v23  ;;  %v1959_v59 = vmul.f32 %v1943_v26, %v1943_v26 }
 0x3d9   : > { %v1684_v63 = vadd.f32 %v1668_v60, %v3328_v12  ;;  %v1958_v16 = vmul.f32 %v1942_v35, %v1942_v35 }
 0x3da   : > { %v1683_v42 = vadd.f32 %v1667_v61, %v3330_v14 }
 0x3db   : > { %v3432_v1 = vadd.f32 %v1959_v59, %v1684_v63 }
 0x3dc   : > { %v3434_v4 = vadd.f32 %v1958_v16, %v1683_v42  ;;  %v2687_v43 = vpop.f32.mrb[30].mxu0 }
 0x3dd   : > { %v1654_v3 = vsub.f32 %v3333_v29, %v2687_v43  ;;  %v1606_v31 = vpop.f32.mrb[31].mxu0  ;;  %v3437_v7 = vpop.f32.mrb[42].mxu1 }
 0x3de   : > { %v1653_v8 = vsub.f32 %v3337_v38, %v1606_v31  ;;  %v1945_v32 = vsub.f32 %v2687_v43, %v3437_v7  ;;  %v3441_v19 = vpop.f32.mrb[43].mxu1 }
 0x3df   : > { %v1670_v12 = vmul.f32 %v1654_v3, %v1654_v3  ;;  %v1944_v47 = vsub.f32 %v1606_v31, %v3441_v19 }
 0x3e0   : > { %v1669_v14 = vmul.f32 %v1653_v8, %v1653_v8  ;;  %v1961_v30 = vmul.f32 %v1945_v32, %v1945_v32 }
 0x3e1   : > { %v1686_v40 = vadd.f32 %v1670_v12, %v3340_v45  ;;  %v1960_v41 = vmul.f32 %v1944_v47, %v1944_v47 }
 0x3e2   : > { %v1685_v48 = vadd.f32 %v1669_v14, %v3342_v10 }
 0x3e3   : > { %v3446_v29 = vadd.f32 %v1961_v30, %v1686_v40 }
 0x3e4   : > { %v3448_v21 = vadd.f32 %v1960_v41, %v1685_v48  ;;  %v2690_v51 = vpop.f32.mrb[32].mxu0 }
 0x3e5   : > { %v1656_v38 = vsub.f32 %v3345_v34, %v2690_v51  ;;  %v1616_v27 = vpop.f32.mrb[33].mxu0  ;;  %v3451_v28 = vpop.f32.mrb[44].mxu1 }
 0x3e6   : > { %v1655_v22 = vsub.f32 %v3349_v0, %v1616_v27  ;;  %v1947_v50 = vsub.f32 %v2690_v51, %v3451_v28  ;;  %v3455_v52 = vpop.f32.mrb[45].mxu1 }
 0x3e7   : > { %v1672_v45 = vmul.f32 %v1656_v38, %v1656_v38  ;;  %v1946_v56 = vsub.f32 %v1616_v27, %v3455_v52 }
 0x3e8   : > { %v1671_v10 = vmul.f32 %v1655_v22, %v1655_v22  ;;  %v1963_v53 = vmul.f32 %v1947_v50, %v1947_v50 }
 0x3e9   : > { %v1688_v23 = vadd.f32 %v1672_v45, %v3352_v55  ;;  %v1962_v26 = vmul.f32 %v1946_v56, %v1946_v56 }
 0x3ea   : > { %v1687_v60 = vadd.f32 %v1671_v10, %v3354_v57 }
 0x3eb   : > { %v3460_v34 = vadd.f32 %v1963_v53, %v1688_v23 }
 0x3ec   : > { %v3462_v35 = vadd.f32 %v1962_v26, %v1687_v60  ;;  %v2693_v61 = vpop.f32.mrb[34].mxu0 }
 0x3ed   : > { %v1658_v0 = vsub.f32 %v3357_v37, %v2693_v61  ;;  %v1626_v59 = vpop.f32.mrb[35].mxu0  ;;  %v3465_v63 = vpop.f32.mrb[46].mxu1 }
 0x3ee   : > { %v1657_v16 = vsub.f32 %v3361_v15, %v1626_v59  ;;  %v1949_v42 = vsub.f32 %v2693_v61, %v3465_v63  ;;  %v3469_v43 = vpop.f32.mrb[47].mxu1 }
 0x3ef   : > { %v1674_v55 = vmul.f32 %v1658_v0, %v1658_v0  ;;  %v1948_v3 = vsub.f32 %v1626_v59, %v3469_v43 }
 0x3f0   : > { %v1673_v57 = vmul.f32 %v1657_v16, %v1657_v16  ;;  %v1965_v31 = vmul.f32 %v1949_v42, %v1949_v42 }
 0x3f1   : > { %v1690_v8 = vadd.f32 %v1674_v55, %v3364_v5  ;;  %v1964_v32 = vmul.f32 %v1948_v3, %v1948_v3 }
 0x3f2   : > { %v1689_v12 = vadd.f32 %v1673_v57, %v3366_v6 }
 0x3f3   : > { %v3474_v37 = vadd.f32 %v1965_v31, %v1690_v8 }
 0x3f4   : > { %v3476_v47 = vadd.f32 %v1964_v32, %v1689_v12  ;;  %v2696_v14 = vpop.f32.mrb[36].mxu0 }
 0x3f5   : > { %v1660_v15 = vsub.f32 %v3369_v17, %v2696_v14  ;;  %v1636_v30 = vpop.f32.mrb[37].mxu0  ;;  %v3479_v40 = vpop.f32.mrb[48].mxu1 }
 0x3f6   : > { %v1659_v41 = vsub.f32 %v3373_v24, %v1636_v30  ;;  %v1951_v48 = vsub.f32 %v2696_v14, %v3479_v40  ;;  %v3483_v51 = vpop.f32.mrb[49].mxu1 }
 0x3f7   : > { %v1676_v5 = vmul.f32 %v1660_v15, %v1660_v15  ;;  %v1950_v38 = vsub.f32 %v1636_v30, %v3483_v51 }
 0x3f8   : > { %v1675_v6 = vmul.f32 %v1659_v41, %v1659_v41  ;;  %v1967_v27 = vmul.f32 %v1951_v48, %v1951_v48 }
 0x3f9   : > { %v1692_v22 = vadd.f32 %v1676_v5, %v3376_v9  ;;  %v1966_v50 = vmul.f32 %v1950_v38, %v1950_v38 }
 0x3fa   : > { %v1691_v45 = vadd.f32 %v1675_v6, %v3378_v44 }
 0x3fb   : > { %v3488_v17 = vadd.f32 %v1967_v27, %v1692_v22 }
 0x3fc   : > { %v3490_v56 = vadd.f32 %v1966_v50, %v1691_v45  ;;  %v2727_v10 = vpop.f32.mrb[38].mxu0 }
 0x3fd   : > { %v2224_v24 = vsub.f32 %v3381_v49, %v2727_v10  ;;  %v2144_v53 = vpop.f32.mrb[39].mxu0 }
 0x3fe   : > { %v2223_v23 = vsub.f32 %v3385_v36, %v2144_v53 }
 0x3ff   : > { %v2240_v26 = vmul.f32 %v2224_v24, %v2224_v24 }
 0x400   : > { %v2239_v60 = vmul.f32 %v2223_v23, %v2223_v23 }
 0x401   : > { %v2256_v61 = vadd.f32 %v2240_v26, %v3390_v20 }
 0x402   : > { %v2255_v0 = vadd.f32 %v2239_v60, %v3392_v58 }
 0x404   : > { %v2271_v9 = vadd.f32 %v2256_v61, %v2255_v0  ;;  %v2730_v59 = vpop.f32.mrb[40].mxu0 }
 0x405   : > { %v2226_v44 = vsub.f32 %v3395_v62, %v2730_v59  ;;  %v2154_v16 = vpop.f32.mrb[41].mxu0 }
 0x406   : > { %v2225_v42 = vsub.f32 %v3399_v2, %v2154_v16 }
 0x407   : > { %v2242_v55 = vmul.f32 %v2226_v44, %v2226_v44 }
 0x408   : > { %v2241_v3 = vmul.f32 %v2225_v42, %v2225_v42 }
 0x409   : > { %v2258_v49 = vadd.f32 %v2242_v55, %v3404_v46 }
 0x40a   : > { %v2257_v57 = vadd.f32 %v2241_v3, %v3406_v18 }
 0x40c   : > { %v2272_v36 = vadd.f32 %v2271_v9, %v2257_v57  ;;  %v2733_v31 = vpop.f32.mrb[42].mxu0 }
 0x40d   : > { %v2228_v8 = vsub.f32 %v3409_v39, %v2733_v31  ;;  %v2164_v20 = vpop.f32.mrb[43].mxu0 }
 0x40e   : > { %v2227_v58 = vsub.f32 %v3413_v33, %v2164_v20  ;;  %v2273_v32 = vadd.f32 %v2272_v36, %v2258_v49 }
 0x40f   : > { %v2244_v12 = vmul.f32 %v2228_v8, %v2228_v8 }
 0x410   : > { %v2243_v14 = vmul.f32 %v2227_v58, %v2227_v58 }
 0x411   : > { %v2260_v62 = vadd.f32 %v2244_v12, %v3418_v54 }
 0x412   : > { %v2259_v2 = vadd.f32 %v2243_v14, %v3420_v11 }
 0x414   : > { %v2274_v15 = vadd.f32 %v2273_v32, %v2259_v2  ;;  %v2736_v30 = vpop.f32.mrb[44].mxu0 }
 0x415   : > { %v2230_v46 = vsub.f32 %v3423_v13, %v2736_v30  ;;  %v2174_v41 = vpop.f32.mrb[45].mxu0 }
 0x416   : > { %v2229_v18 = vsub.f32 %v3427_v25, %v2174_v41  ;;  %v2275_v48 = vadd.f32 %v2274_v15, %v2260_v62 }
 0x417   : > { %v2246_v5 = vmul.f32 %v2230_v46, %v2230_v46 }
 0x418   : > { %v2245_v39 = vmul.f32 %v2229_v18, %v2229_v18 }
 0x419   : > { %v2262_v38 = vadd.f32 %v2246_v5, %v3432_v1 }
 0x41a   : > { %v2261_v33 = vadd.f32 %v2245_v39, %v3434_v4 }
 0x41c   : > { %v2276_v6 = vadd.f32 %v2275_v48, %v2261_v33  ;;  %v2739_v27 = vpop.f32.mrb[46].mxu0 }
 0x41d   : > { %v2232_v54 = vsub.f32 %v3437_v7, %v2739_v27  ;;  %v2184_v22 = vpop.f32.mrb[47].mxu0 }
 0x41e   : > { %v2231_v11 = vsub.f32 %v3441_v19, %v2184_v22  ;;  %v2277_v50 = vadd.f32 %v2276_v6, %v2262_v38 }
 0x41f   : > { %v2248_v45 = vmul.f32 %v2232_v54, %v2232_v54 }
 0x420   : > { %v2247_v13 = vmul.f32 %v2231_v11, %v2231_v11 }
 0x421   : > { %v2264_v10 = vadd.f32 %v2248_v45, %v3446_v29 }
 0x422   : > { %v2263_v25 = vadd.f32 %v2247_v13, %v3448_v21 }
 0x424   : > { %v2278_v24 = vadd.f32 %v2277_v50, %v2263_v25  ;;  %v2742_v53 = vpop.f32.mrb[48].mxu0 }
 0x425   : > { %v2234_v1 = vsub.f32 %v3451_v28, %v2742_v53  ;;  %v2194_v23 = vpop.f32.mrb[49].mxu0 }
 0x426   : > { %v2233_v4 = vsub.f32 %v3455_v52, %v2194_v23  ;;  %v2279_v26 = vadd.f32 %v2278_v24, %v2264_v10 }
 0x427   : > { %v2250_v60 = vmul.f32 %v2234_v1, %v2234_v1 }
 0x428   : > { %v2249_v7 = vmul.f32 %v2233_v4, %v2233_v4 }
 0x429   : > { %v2266_v61 = vadd.f32 %v2250_v60, %v3460_v34 }
 0x42a   : > { %v2265_v19 = vadd.f32 %v2249_v7, %v3462_v35 }
 0x42c   : > { %v2280_v0 = vadd.f32 %v2279_v26, %v2265_v19  ;;  %v2745_v9 = vpop.f32.mrb[50].mxu0 }
 0x42d   : > { %v2236_v29 = vsub.f32 %v3465_v63, %v2745_v9  ;;  %v2204_v59 = vpop.f32.mrb[51].mxu0 }
 0x42e   : > { %v2235_v21 = vsub.f32 %v3469_v43, %v2204_v59  ;;  %v2281_v44 = vadd.f32 %v2280_v0, %v2266_v61 }
 0x42f   : > { %v2252_v16 = vmul.f32 %v2236_v29, %v2236_v29 }
 0x430   : > { %v2251_v28 = vmul.f32 %v2235_v21, %v2235_v21 }
 0x431   : > { %v2268_v42 = vadd.f32 %v2252_v16, %v3474_v37 }
 0x432   : > { %v2267_v52 = vadd.f32 %v2251_v28, %v3476_v47 }
 0x434   : > { %v2282_v55 = vadd.f32 %v2281_v44, %v2267_v52  ;;  %v2748_v3 = vpop.f32.mrb[52].mxu0 }
 0x435   : > { %v2238_v34 = vsub.f32 %v3479_v40, %v2748_v3  ;;  %v2214_v49 = vpop.f32.mrb[53].mxu0 }
 0x436   : > { %v2237_v35 = vsub.f32 %v3483_v51, %v2214_v49  ;;  %v2283_v57 = vadd.f32 %v2282_v55, %v2268_v42 }
 0x437   : > { %v2254_v63 = vmul.f32 %v2238_v34, %v2238_v34 }
 0x438   : > { %v2253_v36 = vmul.f32 %v2237_v35, %v2237_v35 }
 0x439   : > { %v2270_v43 = vadd.f32 %v2254_v63, %v3488_v17 }
 0x43a   : > { %v2269_v31 = vadd.f32 %v2253_v36, %v3490_v56 }
 0x43c   : > { %v2284_v8 = vadd.f32 %v2283_v57, %v2269_v31 }
 0x43e   : > { %v2285_v37 = vadd.f32 %v2284_v8, %v2270_v43 }
 0x440   : > { %2286 = vadd.xlane.f32.xlu0 %v2285_v37 }
 0x4cd   : > { %v2287_v47 = vpop.xlane.xlu0 %2286 }
 0x4ce   : > { %v2288_v20 = vrot.slane %v2287_v47, 4 }
 0x4d0   : > { %v2289_v58 = vadd.f32 %v2288_v20, %v2287_v47 }
 0x4d2   : > { %v2290_v32 = vrot.slane %v2289_v58, 2 }
 0x4d4   : > { %v2291_v40 = vadd.f32 %v2290_v32, %v2289_v58 }
 0x4d6   : > { %v2292_v12 = vrot.slane %v2291_v40, 1 }
 0x4d8   : > { %v2293_v14 = vadd.f32 %v2292_v12, %v2291_v40 }
 0x4da   : > { %2768 = vpush %v2293_v14 }
 0x50b   : > { %s2769_s3 = spop %2768 }
 0x50c   : > { %v2295_v51 = vstv %s2769_s3 }
 0x50d   : > { %2297 = vst.msk [vmem:[%s174_s30] sm:$0x1] %vm2296_vm4, %v2295_v51 }
 0x50e PF: > { %p13_p1 = scmp.ge.s32.totalorder %s2998_s19, 4   ;;  %s3556_s9 = smov %s2921_s10 }
 0x50f   : > { %s3557_s10 = smov %s2925_s11  ;;  %s3558_s11 = smov %s3027_s6 }
 0x510   : > { %s3559_s12 = smov %s2998_s19  ;;  %15 = sbr.rel (!%p13_p1) target bundleno = 4 (0x4), region = 72 }
 0x517   :  { %2315 = vsyncpa [#allocation3], 1 }
 0x518   :  { %2317 = vsyncpa [#allocation3 + $0x1], 1 }
 0x519   :  { %2318 = vsyncpa [#allocation5], 1 }

</bundles_post_ra>
